<compile_context>
chip_gen: v7x
topology: tpu7x:2x2x1
jax: 0.10.0
libtpu: 0.0.40
codegen_flags: <defaults>
</compile_context>

<pallas_src>
import functools

import jax
import jax.numpy as jnp
import numpy as np
from jax import lax
from jax.experimental import pallas as pl
from jax.experimental.pallas import tpu as pltpu


def _round_up(x, m):
    return (x + m - 1) // m * m


def _risk_kernel(x_ref, wband_ref, wfc2_ref, aux_ref, bcls_ref, out_ref,
                 pool_ref, *, tb, sb, h, pwc, whid, outp, k):
    # x_ref     : (tb, h+k-1, pwc)  bf16  padded NHWC rows, pwc=(W+k-1)*C
    # wband_ref : (k, pwc, whid)    bf16  banded conv weights (one band per ky)
    # wfc2_ref  : (whid, outp)      bf16  fused (x-mean + Linear) weight
    # aux_ref   : (3, LANE)         f32   rows: tiled b_conv | b_fc | w_cls
    # bcls_ref  : (1, 1)            f32   SMEM scalar (classifier bias)
    # out_ref   : (1, 1, tb)        f32   lane-dense logits for this batch block
    # pool_ref  : (tb, whid)        f32   VMEM scratch: per-sample y-mean of conv
    nc = tb // sb

    def chunk(i, carry):
        s0 = pl.multiple_of(i * sb, sb)
        xc = x_ref[pl.ds(s0, sb)]                              # (sb, h+k-1, pwc)
        # Conv2d(k=3, pad=1) as k row-banded matmuls, f32 accumulation.
        conv = jnp.dot(xc[:, 0:h, :].reshape(sb * h, pwc), wband_ref[0],
                       preferred_element_type=jnp.float32)     # (sb*h, whid)
        for ky in range(1, k):
            conv = conv + jnp.dot(xc[:, ky:ky + h, :].reshape(sb * h, pwc),
                                  wband_ref[ky],
                                  preferred_element_type=jnp.float32)
        conv = jnp.maximum(conv + aux_ref[0:1, 0:whid], 0.0)   # bias (tiled) + ReLU
        # AdaptiveAvgPool2d(1): mean over y here; mean over x is folded into wfc2.
        pool_ref[pl.ds(s0, sb), :] = jnp.mean(conv.reshape(sb, h, whid), axis=1)
        return carry

    lax.fori_loop(0, nc, chunk, 0, unroll=nc <= 4)

    # Linear(hidden, output_dim) (with the 1/W x-mean folded in) + ReLU.
    fc = jnp.dot(pool_ref[...].astype(jnp.bfloat16), wfc2_ref[...],
                 preferred_element_type=jnp.float32)           # (tb, outp)
    fc = jnp.maximum(fc + aux_ref[1:2, 0:outp], 0.0)

    # classifier Linear(output_dim, 1): lane reduction against the w_cls row.
    logits = jnp.sum(fc * aux_ref[2:3, 0:outp], axis=-1) + bcls_ref[0, 0]
    out_ref[...] = logits.reshape(1, 1, tb)


def multi_modal_risk_predictor(x_nchw, params, tb=None, sb=8):
    """Forward pass.  x_nchw: (N, C, H, W) f32.  Returns (N,) f32 logits.

    params (PyTorch layouts):
      w_conv (hidden, C, 3, 3), b_conv (hidden,), w_fc (out_dim, hidden),
      b_fc (out_dim,), w_cls (1, out_dim), b_cls (1,).
    tb: batch tile per grid step (default 64; use 32-64 on v7x, 64-128 v5e/v6e).
    """
    w_conv, b_conv, w_fc, b_fc, w_cls, b_cls = params
    N, C, H, W = x_nchw.shape
    hidden = w_conv.shape[0]
    out_dim = w_fc.shape[0]
    K = w_conv.shape[2]
    pad = (K - 1) // 2
    PWC = (W + 2 * pad) * C            # padded row width * channels
    WHID = W * hidden                  # conv output lanes: (x, h) interleaved
    OUTP = _round_up(out_dim, 128)
    LANE = max(WHID, OUTP)

    if tb is None:
        tb = 64
    tb = max(sb, min(_round_up(tb, sb), _round_up(N, sb)))
    nblk = pl.cdiv(N, tb)
    Npad = nblk * tb

    # ---- input: NCHW -> padded NHWC -> (Npad, H+2, (W+2)*C) bf16 -------------
    x = jnp.transpose(x_nchw.astype(jnp.float32), (0, 2, 3, 1))   # NHWC
    if Npad > N:
        x = jnp.pad(x, ((0, Npad - N), (0, 0), (0, 0), (0, 0)))
    xp = jnp.pad(x, ((0, 0), (pad, pad), (pad, pad), (0, 0)))
    xr = xp.reshape(Npad, H + 2 * pad, PWC).astype(jnp.bfloat16)

    # ---- weights -------------------------------------------------------------
    # Banded conv weights: wband[ky, (x+kx)*C + c, x*hidden + h] = W[h,c,ky,kx].
    w_khc = jnp.transpose(w_conv.astype(jnp.float32), (2, 3, 1, 0))  # (K,K,C,hid)
    w_flat = w_khc.reshape(K, K * C, hidden)
    cols = [jnp.pad(w_flat, ((0, 0), (xo * C, PWC - K * C - xo * C), (0, 0)))
            for xo in range(W)]
    wband = jnp.concatenate(cols, axis=2).astype(jnp.bfloat16)       # (K,PWC,WHID)

    # Fused pooling(x-mean) + FC weight: wfc2[x*hid + h_in, h_out] = w_fc.T/W.
    wfc2 = jnp.tile(w_fc.T.astype(jnp.float32) / W, (W, 1))          # (WHID,out)
    wfc2 = jnp.pad(wfc2, ((0, 0), (0, OUTP - out_dim))).astype(jnp.bfloat16)

    def _row(v, n):
        v = v.reshape(1, -1).astype(jnp.float32)
        return jnp.pad(v, ((0, 0), (0, n - v.shape[1])))

    aux = jnp.concatenate([_row(jnp.tile(b_conv.reshape(-1), W), LANE),
                           _row(b_fc, LANE),
                           _row(w_cls, LANE)], axis=0)               # (3, LANE)
    b_cls_s = b_cls.reshape(1, 1).astype(jnp.float32)                # SMEM scalar

    # ---- compiler params: raise scoped VMEM only when a large TB needs it ----
    est = (2 * tb * (H + 2 * pad) * 128 * 2
           + 2 * K * _round_up(PWC, 8) * _round_up(WHID, 128) * 2
           + 2 * _round_up(WHID, 8) * OUTP * 2
           + 2 * 3 * _round_up(LANE, 128) * 4
           + tb * WHID * 4
           + 3 * sb * H * WHID * 4)
    cp_kwargs = dict(dimension_semantics=("parallel",))
    if est > 24 * 2 ** 20:
        cp_kwargs["vmem_limit_bytes"] = int(min(max(2 * est, 32 * 2 ** 20),
                                                96 * 2 ** 20))

    kernel = functools.partial(_risk_kernel, tb=tb, sb=sb, h=H, pwc=PWC,
                               whid=WHID, outp=OUTP, k=K)

    out = pl.pallas_call(
        kernel,
        out_shape=jax.ShapeDtypeStruct((nblk, 1, tb), jnp.float32),
        grid=(nblk,),
        in_specs=[
            pl.BlockSpec((tb, H + 2 * pad, PWC), lambda b: (b, 0, 0)),  # input
            pl.BlockSpec((K, PWC, WHID), lambda b: (0, 0, 0)),          # conv W
            pl.BlockSpec((WHID, OUTP), lambda b: (0, 0)),               # pool+fc W
            pl.BlockSpec((3, LANE), lambda b: (0, 0)),                  # biases/w_cls
            pl.BlockSpec(memory_space=pltpu.MemorySpace.SMEM),          # b_cls
        ],
        out_specs=pl.BlockSpec((1, 1, tb), lambda b: (b, 0, 0)),
        scratch_shapes=[pltpu.VMEM((tb, WHID), jnp.float32)],
        compiler_params=pltpu.CompilerParams(**cp_kwargs),
    )(xr, wband, wfc2, aux, b_cls_s)

    return out.reshape(Npad)[:N]                                     # squeeze(-1)


def _reference(x_nchw, params):
    """Pure-JAX f32 reference of the assumed module (independent conv path)."""
    w_conv, b_conv, w_fc, b_fc, w_cls, b_cls = params
    conv = lax.conv_general_dilated(
        x_nchw.astype(jnp.float32), w_conv.astype(jnp.float32),
        window_strides=(1, 1), padding=((1, 1), (1, 1)),
        dimension_numbers=("NCHW", "OIHW", "NCHW"))
    conv = jnp.maximum(conv + b_conv.reshape(1, -1, 1, 1), 0.0)
    feat = conv.mean(axis=(2, 3))                                    # (N, hidden)
    fc = jnp.maximum(feat @ w_fc.T + b_fc, 0.0)
    return (fc @ w_cls.T + b_cls).reshape(x_nchw.shape[0])


def init_params(key, in_channels, hidden_dim, output_dim, K=3):
    """Deterministic synthetic parameters in PyTorch layouts."""
    ks = jax.random.split(key, 6)
    w_conv = 0.1 * jax.random.normal(ks[0], (hidden_dim, in_channels, K, K),
                                     jnp.float32)
    b_conv = 0.01 * jax.random.normal(ks[1], (hidden_dim,), jnp.float32)
    w_fc = 0.1 * jax.random.normal(ks[2], (output_dim, hidden_dim), jnp.float32)
    b_fc = 0.01 * jax.random.normal(ks[3], (output_dim,), jnp.float32)
    w_cls = 0.1 * jax.random.normal(ks[4], (1, output_dim), jnp.float32)
    b_cls = 0.01 * jax.random.normal(ks[5], (1,), jnp.float32)
    return (w_conv, b_conv, w_fc, b_fc, w_cls, b_cls)


if __name__ == "__main__":
    key = jax.random.PRNGKey(0)
    k_x, k_p, k_x2 = jax.random.split(key, 3)

    # visual_params = dict(in_channels=4, hidden_dim=32, output_dim=32)
    N, C, H, W = 2, 4, 16, 16
    hidden_dim, output_dim = 32, 32

    x = jax.random.normal(k_x, (N, C, H, W), jnp.float32)
    params = init_params(k_p, C, hidden_dim, output_dim)

    y = multi_modal_risk_predictor(x, params)
    jax.block_until_ready(y)
    assert y.shape == (N,) and y.dtype == jnp.float32
    y_ref = _reference(x, params)
    np.testing.assert_allclose(np.asarray(y), np.asarray(y_ref),
                               rtol=5e-2, atol=5e-2)

    # Exercise the multi-block grid and multi-chunk inner-loop paths.
    N2 = 20
    x2 = jax.random.normal(k_x2, (N2, C, H, W), jnp.float32)
    y2 = multi_modal_risk_predictor(x2, params, tb=16)
    jax.block_until_ready(y2)
    y2_ref = _reference(x2, params)
    np.testing.assert_allclose(np.asarray(y2), np.asarray(y2_ref),
                               rtol=5e-2, atol=5e-2)

    print("KERNEL_OK")
</pallas_src>

<mosaic_0001>
module attributes {stable_mosaic.version = 11 : i64} {
  func.func @_risk_kernel(%arg0: i32, %arg1: memref<8x18x72xbf16, #tpu.memory_space<vmem>>, %arg2: memref<3x72x512xbf16, #tpu.memory_space<vmem>>, %arg3: memref<512x128xbf16, #tpu.memory_space<vmem>>, %arg4: memref<3x512xf32, #tpu.memory_space<vmem>>, %arg5: memref<1x1xf32, #tpu.memory_space<smem>>, %arg6: memref<1x1x8xf32, #tpu.memory_space<vmem>>, %arg7: memref<8x512xf32, #tpu.memory_space<vmem>>) attributes {dimension_semantics = [#tpu.dimension_semantics<parallel>], iteration_bounds = array<i64: 1>, scalar_prefetch = 0 : i64, scratch_operands = 1 : i64, tpu.core_type = #tpu.core_type<tc>, window_params = [{transform_indices = @transform_0, window_bounds = array<i64: 8, 18, 72>}, {pipeline_mode = #tpu.pipeline_mode<synchronous>, transform_indices = @transform_1, window_bounds = array<i64: 3, 72, 512>}, {pipeline_mode = #tpu.pipeline_mode<synchronous>, transform_indices = @transform_2, window_bounds = array<i64: 512, 128>}, {pipeline_mode = #tpu.pipeline_mode<synchronous>, transform_indices = @transform_3, window_bounds = array<i64: 3, 512>}, {transform_indices = @transform_4, window_bounds = array<i64: 1, 1>}, {transform_indices = @transform_5, window_bounds = array<i64: 1, 1, 8>}]} {
    %c0_i32 = arith.constant 0 : i32
    %c8_i32 = arith.constant 8 : i32
    %0 = arith.muli %c0_i32, %c8_i32 : i32
    %1 = tpu.assume_multiple %0, 8 : i32
    %2 = arith.index_cast %1 : i32 to index
    %c0 = arith.constant 0 : index
    %c0_0 = arith.constant 0 : index
    %3 = vector.load %arg1[%2, %c0, %c0_0] : memref<8x18x72xbf16, #tpu.memory_space<vmem>>, vector<8x18x72xbf16>
    %4 = vector.extract_strided_slice %3 {offsets = [0, 0, 0], sizes = [8, 16, 72], strides = [1, 1, 1]} : vector<8x18x72xbf16> to vector<8x16x72xbf16>
    %5 = vector.shape_cast %4 : vector<8x16x72xbf16> to vector<128x72xbf16>
    %c0_1 = arith.constant 0 : index
    %c0_2 = arith.constant 0 : index
    %c0_3 = arith.constant 0 : index
    %6 = vector.load %arg2[%c0_1, %c0_2, %c0_3] : memref<3x72x512xbf16, #tpu.memory_space<vmem>>, vector<1x72x512xbf16>
    %7 = vector.shape_cast %6 : vector<1x72x512xbf16> to vector<72x512xbf16>
    %cst = arith.constant dense<0.000000e+00> : vector<128x512xf32>
    %8 = tpu.matmul %5, %7, %cst {dimension_numbers = #tpu.dot_dimension_numbers<[1], [0], [0], [1], [0, 0, 1, 1], [], []>} : vector<128x72xbf16>, vector<72x512xbf16>, vector<128x512xf32> -> vector<128x512xf32>
    %9 = vector.extract_strided_slice %3 {offsets = [0, 1, 0], sizes = [8, 16, 72], strides = [1, 1, 1]} : vector<8x18x72xbf16> to vector<8x16x72xbf16>
    %10 = vector.shape_cast %9 : vector<8x16x72xbf16> to vector<128x72xbf16>
    %c1 = arith.constant 1 : index
    %c0_4 = arith.constant 0 : index
    %c0_5 = arith.constant 0 : index
    %11 = vector.load %arg2[%c1, %c0_4, %c0_5] : memref<3x72x512xbf16, #tpu.memory_space<vmem>>, vector<1x72x512xbf16>
    %12 = vector.shape_cast %11 : vector<1x72x512xbf16> to vector<72x512xbf16>
    %cst_6 = arith.constant dense<0.000000e+00> : vector<128x512xf32>
    %13 = tpu.matmul %10, %12, %cst_6 {dimension_numbers = #tpu.dot_dimension_numbers<[1], [0], [0], [1], [0, 0, 1, 1], [], []>} : vector<128x72xbf16>, vector<72x512xbf16>, vector<128x512xf32> -> vector<128x512xf32>
    %14 = arith.addf %8, %13 : vector<128x512xf32>
    %15 = vector.extract_strided_slice %3 {offsets = [0, 2, 0], sizes = [8, 16, 72], strides = [1, 1, 1]} : vector<8x18x72xbf16> to vector<8x16x72xbf16>
    %16 = vector.shape_cast %15 : vector<8x16x72xbf16> to vector<128x72xbf16>
    %c2 = arith.constant 2 : index
    %c0_7 = arith.constant 0 : index
    %c0_8 = arith.constant 0 : index
    %17 = vector.load %arg2[%c2, %c0_7, %c0_8] : memref<3x72x512xbf16, #tpu.memory_space<vmem>>, vector<1x72x512xbf16>
    %18 = vector.shape_cast %17 : vector<1x72x512xbf16> to vector<72x512xbf16>
    %cst_9 = arith.constant dense<0.000000e+00> : vector<128x512xf32>
    %19 = tpu.matmul %16, %18, %cst_9 {dimension_numbers = #tpu.dot_dimension_numbers<[1], [0], [0], [1], [0, 0, 1, 1], [], []>} : vector<128x72xbf16>, vector<72x512xbf16>, vector<128x512xf32> -> vector<128x512xf32>
    %20 = arith.addf %14, %19 : vector<128x512xf32>
    %c0_10 = arith.constant 0 : index
    %c0_11 = arith.constant 0 : index
    %21 = vector.load %arg4[%c0_10, %c0_11] : memref<3x512xf32, #tpu.memory_space<vmem>>, vector<1x512xf32>
    %22 = vector.broadcast %21 : vector<1x512xf32> to vector<128x512xf32>
    %23 = arith.addf %20, %22 : vector<128x512xf32>
    %cst_12 = arith.constant 0.000000e+00 : f32
    %24 = vector.broadcast %cst_12 : f32 to vector<128x512xf32>
    %25 = arith.maximumf %23, %24 : vector<128x512xf32>
    %26 = vector.shape_cast %25 : vector<128x512xf32> to vector<8x16x512xf32>
    %cst_13 = arith.constant dense<0.000000e+00> : vector<8x512xf32>
    %27 = vector.multi_reduction <add>, %26, %cst_13 [1] : vector<8x16x512xf32> to vector<8x512xf32>
    %cst_14 = arith.constant 1.600000e+01 : f32
    %28 = vector.broadcast %cst_14 : f32 to vector<8x512xf32>
    %29 = arith.divf %27, %28 : vector<8x512xf32>
    %30 = arith.index_cast %1 : i32 to index
    %c0_15 = arith.constant 0 : index
    %31 = vector.load %arg7[%30, %c0_15] : memref<8x512xf32, #tpu.memory_space<vmem>>, vector<8x512xf32>
    tpu.vector_store %arg7[%30, %c0_15], %29 {strides = array<i32>} : memref<8x512xf32, #tpu.memory_space<vmem>>, vector<8x512xf32>,
    %c1_i32 = arith.constant 1 : i32
    %c0_16 = arith.constant 0 : index
    %c0_17 = arith.constant 0 : index
    %32 = vector.load %arg7[%c0_16, %c0_17] : memref<8x512xf32, #tpu.memory_space<vmem>>, vector<8x512xf32>
    %33 = arith.truncf %32 : vector<8x512xf32> to vector<8x512xbf16>
    %c0_18 = arith.constant 0 : index
    %c0_19 = arith.constant 0 : index
    %34 = vector.load %arg3[%c0_18, %c0_19] : memref<512x128xbf16, #tpu.memory_space<vmem>>, vector<512x128xbf16>
    %cst_20 = arith.constant dense<0.000000e+00> : vector<8x128xf32>
    %35 = tpu.matmul %33, %34, %cst_20 {dimension_numbers = #tpu.dot_dimension_numbers<[1], [0], [0], [1], [0, 0, 1, 1], [], []>} : vector<8x512xbf16>, vector<512x128xbf16>, vector<8x128xf32> -> vector<8x128xf32>
    %c1_21 = arith.constant 1 : index
    %c0_22 = arith.constant 0 : index
    %36 = vector.load %arg4[%c1_21, %c0_22] : memref<3x512xf32, #tpu.memory_space<vmem>>, vector<1x128xf32>
    %37 = vector.broadcast %36 : vector<1x128xf32> to vector<8x128xf32>
    %38 = arith.addf %35, %37 : vector<8x128xf32>
    %cst_23 = arith.constant 0.000000e+00 : f32
    %39 = vector.broadcast %cst_23 : f32 to vector<8x128xf32>
    %40 = arith.maximumf %38, %39 : vector<8x128xf32>
    %c2_24 = arith.constant 2 : index
    %c0_25 = arith.constant 0 : index
    %41 = vector.load %arg4[%c2_24, %c0_25] : memref<3x512xf32, #tpu.memory_space<vmem>>, vector<1x128xf32>
    %42 = vector.broadcast %41 : vector<1x128xf32> to vector<8x128xf32>
    %43 = arith.mulf %40, %42 : vector<8x128xf32>
    %cst_26 = arith.constant dense<0.000000e+00> : vector<8xf32>
    %44 = vector.multi_reduction <add>, %43, %cst_26 [1] : vector<8x128xf32> to vector<8xf32>
    %c0_27 = arith.constant 0 : index
    %c0_28 = arith.constant 0 : index
    %45 = memref.load %arg5[%c0_27, %c0_28] : memref<1x1xf32, #tpu.memory_space<smem>>
    %46 = vector.broadcast %45 : f32 to vector<8xf32>
    %47 = arith.addf %44, %46 : vector<8xf32>
    %48 = vector.shape_cast %47 : vector<8xf32> to vector<1x1x8xf32>
    %c0_29 = arith.constant 0 : index
    %c0_30 = arith.constant 0 : index
    %c0_31 = arith.constant 0 : index
    %49 = vector.load %arg6[%c0_29, %c0_30, %c0_31] : memref<1x1x8xf32, #tpu.memory_space<vmem>>, vector<1x1x8xf32>
    tpu.vector_store %arg6[%c0_29, %c0_30, %c0_31], %48 {strides = array<i32>} : memref<1x1x8xf32, #tpu.memory_space<vmem>>, vector<1x1x8xf32>,
    return
  }
  func.func @transform_0(%arg0: i32) -> (i32, i32, i32) {
    %c0_i32 = arith.constant 0 : i32
    %c0_i32_0 = arith.constant 0 : i32
    %c0_i32_1 = arith.constant 0 : i32
    return %arg0, %c0_i32, %c0_i32_0 : i32, i32, i32
  }
  func.func @transform_1(%arg0: i32) -> (i32, i32, i32) {
    %c0_i32 = arith.constant 0 : i32
    %c0_i32_0 = arith.constant 0 : i32
    %c0_i32_1 = arith.constant 0 : i32
    %c0_i32_2 = arith.constant 0 : i32
    return %c0_i32, %c0_i32_0, %c0_i32_1 : i32, i32, i32
  }
  func.func @transform_2(%arg0: i32) -> (i32, i32) {
    %c0_i32 = arith.constant 0 : i32
    %c0_i32_0 = arith.constant 0 : i32
    %c0_i32_1 = arith.constant 0 : i32
    return %c0_i32, %c0_i32_0 : i32, i32
  }
  func.func @transform_3(%arg0: i32) -> (i32, i32) {
    %c0_i32 = arith.constant 0 : i32
    %c0_i32_0 = arith.constant 0 : i32
    %c0_i32_1 = arith.constant 0 : i32
    return %c0_i32, %c0_i32_0 : i32, i32
  }
  func.func @transform_4(%arg0: i32) -> (i32, i32) {
    %c0_i32 = arith.constant 0 : i32
    %c0_i32_0 = arith.constant 0 : i32
    %c0_i32_1 = arith.constant 0 : i32
    return %c0_i32, %c0_i32_0 : i32, i32
  }
  func.func @transform_5(%arg0: i32) -> (i32, i32, i32) {
    %c0_i32 = arith.constant 0 : i32
    %c0_i32_0 = arith.constant 0 : i32
    %c0_i32_1 = arith.constant 0 : i32
    return %arg0, %c0_i32, %c0_i32_0 : i32, i32, i32
  }
}

</mosaic_0001>

<bundles_post_ra>
// kernel: tpu_custom_call.1
= control target key start
LH: loop header
LB: loop body
LE: loop exit
PB: predicated region body
PF: predicated region fallthrough
CT: control target
= control target key end

     0   :  { %11 = vsyncpa [#allocation5], 0  ;;  %s3866_s0 = inlined_call_operand.vmem [shape: bf16[8,18,72], index: 0, kind: input, shape index: {}]   ;;  %s3867_s1 = inlined_call_operand.hbm [shape: bf16[3,72,512], index: 1, kind: input, shape index: {}]   ;;  %s3868_s2 = inlined_call_operand.hbm [shape: bf16[512,128], index: 2, kind: input, shape index: {}]   ;;  %s3869_s3 = inlined_call_operand.vmem [shape: f32[3,512], index: 3, kind: input, shape index: {}]   ;;  %s3870_s4 = inlined_call_operand.<no memory space> [shape: f32[1,1], index: 4, kind: input, shape index: {}]   ;;  %s3871_s5 = inlined_call_operand.hbm [shape: f32[1,1,8], index: 5, kind: output, shape index: {}]  }
   0x1   :  { %12 = vsyncpa [#allocation8], 0 }
   0x2   :  { %13 = vsyncpa [#allocation6], 0  ;;  %s3034_s18 = smov [#allocation4]   ;;  %s2962_s22 = scalar_lea.hbm %s3867_s1, 6912 }
   0x3   :  { %s21_s19 = sshll.u32 %s3034_s18, 4  ;;  %p2963_p0 = scmp.ne.s32.totalorder %s3867_s1, %s2962_s22  ;;  %s22_s19 = int_to_ptr.vmem [resolvable:$true] %s21_s19 }
   0x4   :  { %p2966_p1 = scmp.lt.u32.totalorder %s2962_s22, %s3867_s1 }
   0x6   :  { %p2968_p2 = pnand %p2966_p1, %p2963_p0 }
   0x8   :  { %2971 = shalt.err (!%p2968_p2)
}
   0x9   :  { %s2972_s27 = scalar_lea.vmem %s22_s19, 6912  ;;  %p2977_p4 = scmp.lt.s32.totalorder %s22_s19, %s22_s19 }
   0xa   :  { %p2973_p3 = scmp.ne.s32.totalorder %s22_s19, %s2972_s27  ;;  %p2978_p5 = scmp.lt.s32.totalorder %s2972_s27, %s2972_s27 }
   0xc   :  { %p2979_p6 = por %p2978_p5, %p2977_p4 }
   0xe   :  { %p2980_p7 = pnand %p2979_p6, %p2973_p3 }
  0x10   :  { %2983 = shalt.err (!%p2980_p7)
}
  0x11   :  { %s3035_s28 = smov 256   ;;  %s3036_s29 = smov 16  }
  0x12   :  { %27 = dma.hbm_to_vmem [thread:$0]  %s3867_s1, 6912, %s22_s19, [#allocation5], %s3035_s28, %s3035_s28, %s3036_s29  }
  0x13   :  { %s3037_s7 = smov [#allocation7]   ;;  %s2984_s11 = scalar_lea.hbm %s3868_s2, 4096 }
  0x14   :  { %s33_s8 = sshll.u32 %s3037_s7, 4  ;;  %p2985_p8 = scmp.ne.s32.totalorder %s3868_s2, %s2984_s11  ;;  %s34_s8 = int_to_ptr.vmem [resolvable:$true] %s33_s8 }
  0x15   :  { %p2988_p9 = scmp.lt.u32.totalorder %s2984_s11, %s3868_s2 }
  0x17   :  { %p2990_p10 = pnand %p2988_p9, %p2985_p8 }
  0x19   :  { %2993 = shalt.err (!%p2990_p10)
}
  0x1a   :  { %s2994_s16 = scalar_lea.vmem %s34_s8, 4096  ;;  %p2999_p12 = scmp.lt.s32.totalorder %s34_s8, %s34_s8 }
  0x1b   :  { %p2995_p11 = scmp.ne.s32.totalorder %s34_s8, %s2994_s16  ;;  %p3000_p13 = scmp.lt.s32.totalorder %s2994_s16, %s2994_s16 }
  0x1d   :  { %p3001_p0 = por %p3000_p13, %p2999_p12 }
  0x1f   :  { %p3002_p1 = pnand %p3001_p0, %p2995_p11 }
  0x21   :  { %3005 = shalt.err (!%p3002_p1)
}
  0x22   :  { %s3038_s1 = smov 64   ;;  %s3039_s17 = smov 4  }
  0x23   :  { %39 = dma.hbm_to_vmem [thread:$0]  %s3868_s2, 4096, %s34_s8, [#allocation8], %s3038_s1, %s3038_s1, %s3039_s17  }
  0x24   :  { %3028 = dma.done.wait [#allocation5], 6912  }
  0x25   :  { %3029 = vsyncadd [#allocation5], 4294960384 }
  0x26   :  { %3030 = dma.done.wait [#allocation8], 4096  }
  0x27   :  { %3031 = vsyncadd [#allocation8], 4294963200  ;;  %v3040_v0 = vmov 0   ;;  %v2838_v1 = vld [vmem:[#allocation4 + $0x94] ss:$16 sps:$4 sm:$0xff]   ;;  %vm449_vm2 = vcmask 1043456  }
  0x28   :  { %494 = vmatprep.mubr.bf16.mxu0 %v3040_v0  ;;  %607 = vmatprep.mubr.bf16.mxu1 %v3040_v0  ;;  %v2840_v2 = vld [vmem:[#allocation4 + $0x9c] ss:$16 sps:$4 sm:$0xff]   ;;  %v2842_v3 = vld [vmem:[#allocation4 + $0x90] ss:$16 sps:$4 sm:$0xff]   ;;  %v2843_v4 = vld [vmem:[#allocation4 + $0x98] ss:$16 sps:$4 sm:$0xff]  }
  0x29   :  { %462 = vmatprep.subr.bf16.mxu0 %v2838_v1  ;;  %575 = vmatprep.subr.bf16.mxu1 %v2840_v2  ;;  %v2844_v5 = vld [vmem:[#allocation4 + $0xb4] ss:$16 sps:$4 sm:$0xff]   ;;  %v2846_v6 = vld [vmem:[#allocation4 + $0xbc] ss:$16 sps:$4 sm:$0xff]   ;;  %v2848_v7 = vld [vmem:[#allocation4 + $0xb0] ss:$16 sps:$4 sm:$0xff]  }
  0x2a   :  { %463 = vmatpush1.bf16.msra.mxu0 %v2842_v3  ;;  %576 = vmatpush1.bf16.msra.mxu1 %v2843_v4  ;;  %v2849_v8 = vld [vmem:[#allocation4 + $0xb8] ss:$16 sps:$4 sm:$0xff]   ;;  %v2850_v9 = vld [vmem:[#allocation4 + $0xd4] ss:$16 sps:$4 sm:$0xff]   ;;  %v2852_v10 = vld [vmem:[#allocation4 + $0xdc] ss:$16 sps:$4 sm:$0xff]  }
  0x2b   :  { %464 = vmatprep.subr.bf16.mxu0 %v2844_v5  ;;  %577 = vmatprep.subr.bf16.mxu1 %v2846_v6  ;;  %v2854_v11 = vld [vmem:[#allocation4 + $0xd0] ss:$16 sps:$4 sm:$0xff]   ;;  %v2855_v12 = vld [vmem:[#allocation4 + $0xd8] ss:$16 sps:$4 sm:$0xff]   ;;  %v2856_v13 = vld [vmem:[#allocation4 + $0xf4] ss:$16 sps:$4 sm:$0xff]  }
  0x2c   :  { %vm96_vm0 = vsmask.f32 3328  ;;  %v2858_v14 = vld [vmem:[#allocation4 + $0xfc] ss:$16 sps:$4 sm:$0xff]   ;;  %vm97_vm1 = vsmask.f32 7440 }
  0x2d   :  { %v2860_v15 = vld [vmem:[#allocation4 + $0xf0] ss:$16 sps:$4 sm:$0xff]   ;;  %v2861_v16 = vld [vmem:[#allocation4 + $0xf8] ss:$16 sps:$4 sm:$0xff]   ;;  %v3106_v21 = vld [vmem:[%s3866_s0 + $0x4] sm:$0xf] }
  0x2e   :  { %465 = vmatpush1.bf16.msra.mxu0 %v2848_v7  ;;  %578 = vmatpush1.bf16.msra.mxu1 %v2849_v8  ;;  %v308_v17 = vld [vmem:[#allocation4 + $0x110] sm:$0xff]  ;;  %v309_v18 = vld [vmem:[#allocation4 + $0x118] sm:$0xff]  ;;  %v3101_v20 = vld [vmem:[%s3866_s0] sm:$0xf]  ;;  %v109_v28 = vshll.u32 %v3106_v21, 16  ;;  %v113_v29 = vshrl.u32 %v3106_v21, 16 }
  0x2f   :  { %466 = vmatprep.subr.bf16.mxu0 %v2850_v9  ;;  %579 = vmatprep.subr.bf16.mxu1 %v2852_v10  ;;  %v2502_v19 = vcombine.low %v308_v17, %v308_v17  ;;  %v2503_v22 = vcombine.high %v308_v17, %v308_v17  ;;  %v2504_v23 = vcombine.low %v309_v18, %v309_v18  ;;  %v3111_v24 = vld [vmem:[%s3866_s0 + $0x8] sm:$0x1]  ;;  %v100_v25 = vshrl.u32 %v3101_v20, 16  ;;  %v2868_v36 = vld [vmem:[#allocation4 + $0x4] ss:$16 sps:$4 sm:$0xff]   ;;  %vm3133_vm4 = vmor %vm96_vm0, %vm97_vm1  ;;  %s3041_s20 = smov [#allocation9]  }
  0x30   :  { %v103_v26 = vshll.u32 %v3101_v20, 16  ;;  %v2505_v27 = vcombine.high %v309_v18, %v309_v18  ;;  %v119_v30 = vshll.u32 %v3111_v24, 16  ;;  %vm424_vm3 = vcmask 588800   ;;  %v2871_v40 = vld [vmem:[#allocation4 + $0xc] ss:$16 sps:$4 sm:$0xff]   ;;  %s2468_s21 = sshll.u32 %s3041_s20, 4  ;;  %s2469_s21 = int_to_ptr.vmem [resolvable:$true] %s2468_s21 }
  0x31   :  { %v451_v31 = vsel %vm449_vm2, %v2502_v19, 0  ;;  %v102_v32 = vrot.slane %v100_v25, 4  ;;  %v111_v34 = vrot.slane %v109_v28, 5  ;;  %v115_v35 = vrot.slane %v113_v29, 4  ;;  %v3123_v41 = vld [vmem:[%s3866_s0 + $0xc] sm:$0xf]  ;;  %p3011_p3 = scmp.lt.s32.totalorder %s2469_s21, %s2469_s21 }
  0x32   :  { %467 = vmatpush1.bf16.msra.mxu0 %v2854_v11  ;;  %580 = vmatpush1.bf16.msra.mxu1 %v2855_v12  ;;  %v105_v33 = vrot.slane %v103_v26, 5  ;;  %v457_v37 = vsel %vm449_vm2, %v2504_v23, 0  ;;  %v121_v39 = vrot.slane %v119_v30, 5  ;;  %v3127_v42 = vcombine.low %v3101_v20, %v3106_v21  ;;  %v3140_v45 = vld [vmem:[%s3866_s0 + $0x10] sm:$0xf]  ;;  %s3010_s22 = scalar_lea.vmem %s2469_s21, 32 }
  0x33   :  { %468 = vmatprep.subr.bf16.mxu0 %v2856_v13  ;;  %581 = vmatprep.subr.bf16.mxu1 %v2858_v14  ;;  %v116_v44 = vor.u32 %v115_v35, %v111_v34  ;;  %v3145_v46 = vld [vmem:[%s3866_s0 + $0x14] sm:$0x1]  ;;  %v124_v47 = vshrl.u32 %v3123_v41, 16  ;;  %v127_v48 = vshll.u32 %v3123_v41, 16  ;;  %v133_v50 = vshll.u32 %v3140_v45, 16 }
  0x34   :  { %v106_v38 = vor.u32 %v105_v33, %v102_v32  ;;  %v137_v51 = vshrl.u32 %v3140_v45, 16  ;;  %v143_v52 = vshll.u32 %v3145_v46, 16  ;;  %v2866_v54 = vld [vmem:[#allocation4] ss:$16 sps:$4 sm:$0xff]   ;;  %v3154_v57 = vcombine.low %v3123_v41, %v3140_v45  ;;  %v2869_v59 = vld [vmem:[#allocation4 + $0x8] ss:$16 sps:$4 sm:$0xff]  }
  0x35   :  { %v117_v53 = vrot.slane %v116_v44, 4  ;;  %v126_v55 = vrot.slane %v124_v47, 4  ;;  %v129_v56 = vrot.slane %v127_v48, 5  ;;  %v135_v60 = vrot.slane %v133_v50, 5  ;;  %v2874_v2 = vld [vmem:[#allocation4 + $0x24] ss:$16 sps:$4 sm:$0xff]  }
  0x36   :  { %469 = vmatpush1.bf16.msra.mxu0 %v2860_v15  ;;  %582 = vmatpush1.bf16.msra.mxu1 %v2861_v16  ;;  %v107_v49 = vrot.slane %v106_v38, 4  ;;  %v139_v61 = vrot.slane %v137_v51, 4  ;;  %v145_v62 = vrot.slane %v143_v52, 5  ;;  %v2877_v3 = vld [vmem:[#allocation4 + $0x2c] ss:$16 sps:$4 sm:$0xff]   ;;  %vm1088_vm5 = vcmask 1042432  }
  0x37   :  { %2506 = vmatprep.subr.msk.bf16.mxu0 %vm449_vm2, %v2503_v22  ;;  %2515 = vmatprep.subr.msk.bf16.mxu1 %vm449_vm2, %v2505_v27  ;;  %v122_v63 = vsel %vm3133_vm4, %v117_v53, %v121_v39  ;;  %v130_v1 = vor.u32 %v129_v56, %v126_v55  ;;  %v3163_v4 = vld [vmem:[%s3866_s0 + $0x18] sm:$0xf]  ;;  %v3168_v7 = vld [vmem:[%s3866_s0 + $0x1c] sm:$0xf]  ;;  %v3173_v8 = vld [vmem:[%s3866_s0 + $0x20] sm:$0x1] }
  0x38   :  { %v112_v58 = vsel %vm3133_vm4, %v107_v49, %v111_v34  ;;  %v140_v6 = vor.u32 %v139_v61, %v135_v60  ;;  %v148_v9 = vshrl.u32 %v3163_v4, 16  ;;  %v151_v10 = vshll.u32 %v3163_v4, 16  ;;  %v2872_v12 = vld [vmem:[#allocation4 + $0x20] ss:$16 sps:$4 sm:$0xff]   ;;  %v3183_v16 = vld [vmem:[%s3866_s0 + $0x24] sm:$0xf] }
  0x39   :  { %v2478_v5 = vcombine.low %v112_v58, %v122_v63  ;;  %v131_v11 = vrot.slane %v130_v1, 4  ;;  %v157_v13 = vshll.u32 %v3168_v7, 16  ;;  %v161_v14 = vshrl.u32 %v3168_v7, 16  ;;  %v3190_v22 = vld [vmem:[%s3866_s0 + $0x28] sm:$0xf] }
  0x3a   :  { %471 = vmatpush1.bf16.msra.mxu0 %v451_v31  ;;  %584 = vmatpush1.bf16.msra.mxu1 %v457_v37  ;;  %v167_v15 = vshll.u32 %v3173_v8, 16  ;;  %v141_v17 = vrot.slane %v140_v6, 4  ;;  %v150_v18 = vrot.slane %v148_v9, 4  ;;  %v153_v19 = vrot.slane %v151_v10, 5  ;;  %v2875_v26 = vld [vmem:[#allocation4 + $0x28] ss:$16 sps:$4 sm:$0xff]  }
  0x3b   :  { %854 = vmatprep.subr.bf16.mxu0 %v2868_v36  ;;  %967 = vmatprep.subr.bf16.mxu1 %v2871_v40  ;;  %v172_v23 = vshrl.u32 %v3183_v16, 16  ;;  %v136_v25 = vsel %vm3133_vm4, %v131_v11, %v135_v60  ;;  %v3195_v27 = vrot.slane %v157_v13, 5  ;;  %v163_v28 = vrot.slane %v161_v14, 4  ;;  %v3206_v35 = vld [vmem:[%s3866_s0 + $0x2c] sm:$0x1] }
  0x3c   :  { %v169_v29 = vrot.slane %v167_v15, 5  ;;  %v146_v30 = vsel %vm3133_vm4, %v141_v17, %v145_v62  ;;  %v154_v31 = vor.u32 %v153_v19, %v150_v18  ;;  %v175_v33 = vshll.u32 %v3183_v16, 16  ;;  %v2880_v38 = vld [vmem:[#allocation4 + $0x44] ss:$16 sps:$4 sm:$0xff]   ;;  %v2878_v47 = vld [vmem:[#allocation4 + $0x40] ss:$16 sps:$4 sm:$0xff]  }
  0x3d   :  { %2507 = vmatmul.mubr.msk.bf16.vlgmr.msra.gmra.mrb[0].mxu0 %vm424_vm3, %v2478_v5  ;;  %2516 = vmatmul.mubr.msk.bf16.vlgmr.msra.gmra.mrb[0].mxu1 %vm424_vm3, %v2478_v5  ;;  %v174_v32 = vrot.slane %v172_v23, 4  ;;  %v164_v34 = vor.u32 %v163_v28, %v3195_v27  ;;  %v181_v36 = vshll.u32 %v3190_v22, 16  ;;  %v185_v37 = vshrl.u32 %v3190_v22, 16  ;;  %v2881_v48 = vld [vmem:[#allocation4 + $0x48] ss:$16 sps:$4 sm:$0xff]  }
  0x3e   :  { %855 = vmatpush1.bf16.msra.mxu0 %v2866_v54  ;;  %968 = vmatpush1.bf16.msra.mxu1 %v2869_v59  ;;  %v2479_v39 = vcombine.low %v136_v25, %v146_v30  ;;  %v155_v40 = vrot.slane %v154_v31, 4  ;;  %v177_v44 = vrot.slane %v175_v33, 5  ;;  %v3212_v49 = vcombine.low %v3163_v4, %v3168_v7  ;;  %v2883_v53 = vld [vmem:[#allocation4 + $0x4c] ss:$16 sps:$4 sm:$0xff]   ;;  %v3223_v55 = vld [vmem:[%s3866_s0 + $0x30] sm:$0xf] }
  0x3f   :  { %504 = vmatprep.mubr.bf16.mxu0 %v3040_v0  ;;  %617 = vmatprep.mubr.bf16.mxu1 %v3040_v0  ;;  %v165_v50 = vrot.slane %v164_v34, 4  ;;  %v3214_v51 = vrot.slane %v181_v36, 5  ;;  %v187_v52 = vrot.slane %v185_v37, 4  ;;  %v3218_v54 = vcombine.low %v3183_v16, %v3190_v22  ;;  %v3228_v56 = vld [vmem:[%s3866_s0 + $0x34] sm:$0xf] }
  0x40   :  { %856 = vmatprep.subr.bf16.mxu0 %v2874_v2  ;;  %969 = vmatprep.subr.bf16.mxu1 %v2877_v3  ;;  %v196_v58 = vshrl.u32 %v3223_v55, 16  ;;  %v199_v59 = vshll.u32 %v3223_v55, 16  ;;  %v160_v60 = vsel %vm3133_vm4, %v155_v40, %v3195_v27  ;;  %v191_v61 = vshll.u32 %v3206_v35, 16  ;;  %v2886_v1 = vld [vmem:[#allocation4 + $0x64] ss:$16 sps:$4 sm:$0xff]  }
  0x41   :  { %v205_v62 = vshll.u32 %v3228_v56, 16  ;;  %v209_v63 = vshrl.u32 %v3228_v56, 16  ;;  %v3240_v2 = vld [vmem:[#allocation4 + $0x80] sm:$0xff]  ;;  %v170_v3 = vsel %vm3133_vm4, %v165_v50, %v169_v29  ;;  %v178_v5 = vor.u32 %v177_v44, %v174_v32  ;;  %v3250_v9 = vld [vmem:[%s3866_s0 + $0x38] sm:$0x1] }
  0x42   :  { %857 = vmatpush1.bf16.msra.mxu0 %v2872_v12  ;;  %970 = vmatpush1.bf16.msra.mxu1 %v2875_v26  ;;  %v188_v6 = vor.u32 %v187_v52, %v3214_v51  ;;  %v2884_v10 = vld [vmem:[#allocation4 + $0x60] ss:$16 sps:$4 sm:$0xff]   ;;  %v3255_v11 = vld [vmem:[%s3866_s0 + $0x3c] sm:$0xf]  ;;  %v198_v12 = vrot.slane %v196_v58, 4  ;;  %v201_v13 = vrot.slane %v199_v59, 5  ;;  %v2549_v25 = vcombine.high %v3240_v2, %v3240_v2 }
  0x43   :  { %858 = vmatprep.subr.bf16.mxu0 %v2880_v38  ;;  %971 = vmatprep.subr.bf16.mxu1 %v2883_v53  ;;  %v3257_v14 = vrot.slane %v205_v62, 5  ;;  %v211_v15 = vrot.slane %v209_v63, 4  ;;  %v3262_v17 = vld [vmem:[%s3866_s0 + $0x40] sm:$0xf]  ;;  %v220_v18 = vshrl.u32 %v3255_v11, 16  ;;  %v2480_v26 = vcombine.low %v160_v60, %v170_v3  ;;  %v95_v58 = vld [vmem:[#allocation4 + $0x88] sm:$0xff] }
  0x44   :  { %v2887_v19 = vld [vmem:[#allocation4 + $0x68] ss:$16 sps:$4 sm:$0xff]   ;;  %v2889_v23 = vld [vmem:[#allocation4 + $0x6c] ss:$16 sps:$4 sm:$0xff]   ;;  %v215_v27 = vshll.u32 %v3250_v9, 16  ;;  %v223_v28 = vshll.u32 %v3255_v11, 16  ;;  %v202_v36 = vor.u32 %v201_v13, %v198_v12 }
  0x45   :  { %2508 = vmatmul.mubr.msk.bf16.gmra.mrb[4].mxu0 %vm424_vm3, %v2479_v39  ;;  %2517 = vmatmul.mubr.msk.bf16.gmra.mrb[4].mxu1 %vm424_vm3, %v2479_v39  ;;  %v229_v29 = vshll.u32 %v3262_v17, 16  ;;  %v3273_v30 = vld [vmem:[%s3866_s0 + $0x48] sm:$0xf]  ;;  %v179_v31 = vrot.slane %v178_v5, 4  ;;  %v189_v32 = vrot.slane %v188_v6, 4  ;;  %v193_v33 = vrot.slane %v191_v61, 5 }
  0x46   :  { %514 = vmatprep.mubr.bf16.mxu0 %v3040_v0  ;;  %627 = vmatprep.mubr.bf16.mxu1 %v3040_v0  ;;  %v233_v34 = vshrl.u32 %v3262_v17, 16  ;;  %v212_v37 = vor.u32 %v211_v15, %v3257_v14  ;;  %v3280_v38 = vld [vmem:[%s3866_s0 + $0x44] sm:$0x1]  ;;  %v222_v39 = vrot.slane %v220_v18, 4  ;;  %v3285_v40 = vld [vmem:[%s3866_s0 + $0x4c] sm:$0xf]  ;;  %v2551_v18 = vcombine.high %v95_v58, %v95_v58 }
  0x47   :  { %859 = vmatpush1.bf16.msra.mxu0 %v2878_v47  ;;  %972 = vmatpush1.bf16.msra.mxu1 %v2881_v48  ;;  %v225_v44 = vrot.slane %v223_v28, 5  ;;  %v3287_v47 = vrot.slane %v229_v29, 5  ;;  %v244_v50 = vshrl.u32 %v3273_v30, 16  ;;  %v217_v52 = vrot.slane %v215_v27, 5  ;;  %v3306_v63 = vld [vmem:[%s3866_s0 + $0x54] sm:$0xf] }
  0x48   :  { %860 = vmatprep.subr.bf16.mxu0 %v2886_v1  ;;  %973 = vmatprep.subr.bf16.mxu1 %v2889_v23  ;;  %v235_v48 = vrot.slane %v233_v34, 4  ;;  %v247_v53 = vshll.u32 %v3273_v30, 16  ;;  %v184_v59 = vsel %vm3133_vm4, %v179_v31, %v3214_v51  ;;  %v194_v60 = vsel %vm3133_vm4, %v189_v32, %v193_v33  ;;  %v2897_v1 = vld [vmem:[#allocation4 + $0x124] ss:$16 sps:$4 sm:$0xff]   ;;  %v3315_v13 = vld [vmem:[%s3866_s0 + $0x50] sm:$0x1] }
  0x49   :  { %v253_v61 = vshll.u32 %v3285_v40, 16  ;;  %v257_v62 = vshrl.u32 %v3285_v40, 16  ;;  %v203_v3 = vrot.slane %v202_v36, 4  ;;  %v213_v5 = vrot.slane %v212_v37, 4  ;;  %v3321_v27 = vld [vmem:[%s3866_s0 + $0x58] sm:$0xf] }
  0x4a   :  { %v239_v6 = vshll.u32 %v3280_v38, 16  ;;  %v2548_v51 = vcombine.low %v3240_v2, %v3240_v2  ;;  %v236_v12 = vor.u32 %v235_v48, %v3287_v47  ;;  %v246_v15 = vrot.slane %v244_v50, 4  ;;  %v2900_v36 = vld [vmem:[#allocation4 + $0x12c] ss:$16 sps:$4 sm:$0xff]   ;;  %v2895_v43 = vld [vmem:[#allocation4 + $0x120] ss:$16 sps:$4 sm:$0xff]  }
  0x4b   :  { %861 = vmatpush1.bf16.msra.mxu0 %v2884_v10  ;;  %974 = vmatpush1.bf16.msra.mxu1 %v2887_v19  ;;  %v226_v10 = vor.u32 %v225_v44, %v222_v39  ;;  %v2481_v19 = vcombine.low %v184_v59, %v194_v60  ;;  %v249_v23 = vrot.slane %v247_v53, 5  ;;  %v3323_v2 = vrot.slane %v253_v61, 5  ;;  %v3340_v50 = vld [vmem:[%s3866_s0 + $0x5c] sm:$0x1] }
  0x4c   :  { %2552 = vmatprep.subr.msk.bf16.mxu0 %vm449_vm2, %v2549_v25  ;;  %v843_v25 = vsel %vm449_vm2, %v2548_v51, 0  ;;  %v259_v28 = vrot.slane %v257_v62, 4  ;;  %2561 = vmatprep.subr.msk.bf16.mxu1 %vm449_vm2, %v2551_v18  ;;  %v268_v29 = vshrl.u32 %v3306_v63, 16  ;;  %v208_v31 = vsel %vm3133_vm4, %v203_v3, %v3257_v14 }
  0x4d   :  { %2509 = vmatmul.mubr.msk.bf16.gmra.mrb[8].mxu0 %vm424_vm3, %v2480_v26  ;;  %2518 = vmatmul.mubr.msk.bf16.gmra.mrb[8].mxu1 %vm424_vm3, %v2480_v26  ;;  %v2550_v26 = vcombine.low %v95_v58, %v95_v58  ;;  %v241_v32 = vrot.slane %v239_v6, 5  ;;  %v271_v34 = vshll.u32 %v3306_v63, 16  ;;  %v218_v37 = vsel %vm3133_vm4, %v213_v5, %v217_v52 }
  0x4e   :  { %524 = vmatprep.mubr.bf16.mxu0 %v3040_v0  ;;  %637 = vmatprep.mubr.bf16.mxu1 %v3040_v0  ;;  %v227_v39 = vrot.slane %v226_v10, 4  ;;  %v237_v44 = vrot.slane %v236_v12, 4  ;;  %v263_v48 = vshll.u32 %v3315_v13, 16  ;;  %v250_v14 = vor.u32 %v249_v23, %v246_v15 }
  0x4f   :  { %863 = vmatpush1.bf16.msra.mxu0 %v843_v25  ;;  %v849_v33 = vsel %vm449_vm2, %v2550_v26, 0  ;;  %v270_v53 = vrot.slane %v268_v29, 4  ;;  %v273_v58 = vrot.slane %v271_v34, 5  ;;  %v3344_v52 = vcombine.low %v3223_v55, %v3228_v56  ;;  %v2902_v25 = vld [vmem:[#allocation4 + $0x140] ss:$16 sps:$4 sm:$0xff]  }
  0x50   :  { %1316 = vmatprep.subr.bf16.mxu0 %v2897_v1  ;;  %976 = vmatpush1.bf16.msra.mxu1 %v849_v33  ;;  %v260_v59 = vor.u32 %v259_v28, %v3323_v2  ;;  %v277_v60 = vshll.u32 %v3321_v27, 16  ;;  %v3352_v61 = vcombine.low %v3255_v11, %v3262_v17  ;;  %v3356_v62 = vcombine.low %v3273_v30, %v3285_v40 }
  0x51   :  { %v1093_v1 = vrot.slane %v3106_v21, 5  ;;  %v1096_v3 = vrot.slane %v3111_v24, 5  ;;  %v281_v5 = vshrl.u32 %v3321_v27, 16  ;;  %1429 = vmatprep.subr.bf16.mxu1 %v2900_v36  ;;  %v3363_v6 = vcombine.low %v3306_v63, %v3321_v27 }
  0x52   :  { %v2482_v51 = vcombine.low %v208_v31, %v218_v37  ;;  %v287_v10 = vshll.u32 %v3340_v50, 16  ;;  %vm1089_vm6 = vcmask 1046532   ;;  %v232_v12 = vsel %vm3133_vm4, %v227_v39, %v3287_v47 }
  0x53   :  { %v242_v21 = vsel %vm3133_vm4, %v237_v44, %v241_v32  ;;  %v3371_v24 = vrot.slane %v250_v14, 4  ;;  %v274_v15 = vor.u32 %v273_v58, %v270_v53  ;;  %v261_v18 = vrot.slane %v260_v59, 4  ;;  %vm3375_vm7 = vmor %vm1088_vm5, %vm1089_vm6 }
  0x54   :  { %v3373_v23 = vrot.slane %v277_v60, 5  ;;  %v2570_v26 = vrot.slane %v3101_v20, 9  ;;  %v283_v28 = vrot.slane %v281_v5, 4  ;;  %v1095_v29 = vrot.slane %v1093_v1, 4 }
  0x55   :  { %2510 = vmatmul.mubr.msk.bf16.gmra.mrb[12].mxu0 %vm424_vm3, %v2481_v19  ;;  %2519 = vmatmul.mubr.msk.bf16.gmra.mrb[12].mxu1 %vm424_vm3, %v2481_v19  ;;  %v265_v19 = vrot.slane %v263_v48, 5  ;;  %v2483_v31 = vcombine.low %v232_v12, %v242_v21  ;;  %v3380_v47 = vrot.slane %v287_v10, 5  ;;  %v2571_v33 = vrot.slane %v3123_v41, 9 }
  0x56   :  { %534 = vmatprep.mubr.bf16.mxu0 %v3040_v0  ;;  %647 = vmatprep.mubr.bf16.mxu1 %v3040_v0  ;;  %v1094_v32 = vsel %vm3375_vm7, %v2570_v26, %v1093_v1  ;;  %v256_v34 = vsel %vm3133_vm4, %v3371_v24, %v3323_v2  ;;  %v3391_v20 = vrot.slane %v274_v15, 4  ;;  %v1097_v36 = vsel %vm3375_vm7, %v1095_v29, %v1096_v3 }
  0x57   :  { %v1100_v37 = vrot.slane %v3140_v45, 5  ;;  %v3398_v41 = vcombine.low %v1094_v32, %v1097_v36  ;;  %v1103_v39 = vrot.slane %v3145_v46, 5  ;;  %v2572_v44 = vrot.slane %v3163_v4, 9 }
  0x58   :  { %v1107_v48 = vrot.slane %v3168_v7, 5  ;;  %v1110_v53 = vrot.slane %v3173_v8, 5  ;;  %v2573_v45 = vrot.slane %v3183_v16, 9  ;;  %v1114_v60 = vrot.slane %v3190_v22, 5 }
  0x59   :  { %v1101_v2 = vsel %vm3375_vm7, %v2571_v33, %v1100_v37  ;;  %v1102_v14 = vrot.slane %v1100_v37, 4  ;;  %v1117_v46 = vrot.slane %v3206_v35, 5  ;;  %v2574_v7 = vrot.slane %v3223_v55, 9 }
  0x5a   :  { %v1108_v58 = vsel %vm3375_vm7, %v2572_v44, %v1107_v48  ;;  %v1109_v59 = vrot.slane %v1107_v48, 4  ;;  %v1121_v1 = vrot.slane %v3228_v56, 5  ;;  %v1124_v3 = vrot.slane %v3250_v9, 5 }
  0x5b   :  { %v1104_v4 = vsel %vm3375_vm7, %v1102_v14, %v1103_v39  ;;  %v1115_v5 = vsel %vm3375_vm7, %v2573_v45, %v1114_v60  ;;  %v1116_v22 = vrot.slane %v1114_v60, 4  ;;  %v2575_v55 = vrot.slane %v3255_v11, 9  ;;  %v2912_v45 = vld [vmem:[#allocation4 + $0x164] ss:$16 sps:$4 sm:$0xff]   ;;  %v2913_v60 = vld [vmem:[#allocation4 + $0x168] ss:$16 sps:$4 sm:$0xff]  }
  0x5c   :  { %v3416_v8 = vcombine.low %v1101_v2, %v1104_v4  ;;  %v1111_v16 = vsel %vm3375_vm7, %v1109_v59, %v1110_v53  ;;  %v1122_v35 = vsel %vm3375_vm7, %v2574_v7, %v1121_v1  ;;  %v1123_v10 = vrot.slane %v1121_v1, 4  ;;  %v2910_v59 = vld [vmem:[#allocation4 + $0x160] ss:$16 sps:$4 sm:$0xff]   ;;  %v1165_v7 = vld [vmem:[#allocation4 + $0x1a8] sm:$0xff] }
  0x5d   :  { %2511 = vmatmul.mubr.msk.bf16.gmra.mrb[16].mxu0 %vm424_vm3, %v2482_v51  ;;  %2520 = vmatmul.mubr.msk.bf16.gmra.mrb[16].mxu1 %vm424_vm3, %v2482_v51  ;;  %v3422_v51 = vcombine.low %v1108_v58, %v1111_v16  ;;  %v266_v56 = vsel %vm3133_vm4, %v261_v18, %v265_v19  ;;  %v1118_v9 = vsel %vm3375_vm7, %v1116_v22, %v1117_v46  ;;  %v1128_v12 = vrot.slane %v3262_v17, 5  ;;  %v2915_v58 = vld [vmem:[#allocation4 + $0x16c] ss:$16 sps:$4 sm:$0xff]   ;;  %v2919_v46 = vld [vmem:[#allocation4 + $0x184] ss:$16 sps:$4 sm:$0xff]  }
  0x5e   :  { %544 = vmatprep.mubr.bf16.mxu0 %v3040_v0  ;;  %657 = vmatprep.mubr.bf16.mxu1 %v3040_v0  ;;  %v1131_v21 = vrot.slane %v3280_v38, 5  ;;  %v284_v24 = vor.u32 %v283_v28, %v3373_v23  ;;  %v3436_v15 = vcombine.low %v1115_v5, %v1118_v9  ;;  %v1125_v11 = vsel %vm3375_vm7, %v1123_v10, %v1124_v3  ;;  %v1164_v4 = vld [vmem:[#allocation4 + $0x1a0] sm:$0xff]  ;;  %v2921_v3 = vld [vmem:[#allocation4 + $0x188] ss:$16 sps:$4 sm:$0xff]  }
  0x5f   :  { %v3442_v18 = vcombine.low %v1122_v35, %v1125_v11  ;;  %v1129_v17 = vsel %vm3375_vm7, %v2575_v55, %v1128_v12  ;;  %v1130_v38 = vrot.slane %v1128_v12, 4  ;;  %v2576_v19 = vrot.slane %v3273_v30, 9  ;;  %v2917_v1 = vld [vmem:[#allocation4 + $0x180] ss:$16 sps:$4 sm:$0xff]   ;;  %v2942_v9 = vld [vmem:[#allocation7 + $0x58] sm:$0xff]  }
  0x60   :  { %v1135_v26 = vrot.slane %v3285_v40, 5  ;;  %v1138_v28 = vrot.slane %v3315_v13, 5  ;;  %v2484_v29 = vcombine.low %v256_v34, %v266_v56  ;;  %v285_v32 = vrot.slane %v284_v24, 4  ;;  %v2940_v55 = vld [vmem:[#allocation7 + $0xd0] sm:$0xff]   ;;  %v2943_v12 = vld [vmem:[#allocation7 + $0x18] sm:$0xff]   ;;  %v2948_v11 = vld [vmem:[#allocation7 + $0xe0] sm:$0xff]  }
  0x61   :  { %v280_v30 = vsel %vm3133_vm4, %v3391_v20, %v3373_v23  ;;  %v2577_v13 = vrot.slane %v3306_v63, 9  ;;  %v1142_v34 = vrot.slane %v3321_v27, 5  ;;  %v1145_v48 = vrot.slane %v3340_v50, 5  ;;  %v2898_v63 = vld [vmem:[#allocation4 + $0x128] ss:$16 sps:$4 sm:$0xff]   ;;  %v2941_v56 = vld [vmem:[#allocation7 + $0x90] sm:$0xff]  }
  0x62   :  { %v1136_v36 = vsel %vm3375_vm7, %v2576_v19, %v1135_v26  ;;  %v1137_v37 = vrot.slane %v1135_v26, 4  ;;  %v290_v40 = vsel %vm3133_vm4, %v285_v32, %v3380_v47  ;;  %v2904_v27 = vld [vmem:[#allocation4 + $0x144] ss:$16 sps:$4 sm:$0xff]   ;;  %v2907_v50 = vld [vmem:[#allocation4 + $0x14c] ss:$16 sps:$4 sm:$0xff]   ;;  %v2603_v16 = vcombine.high %v1164_v4, %v1164_v4 }
  0x63   :  { %v1143_v2 = vsel %vm3375_vm7, %v2577_v13, %v1142_v34  ;;  %v1144_v14 = vrot.slane %v1142_v34, 4  ;;  %v2485_v53 = vcombine.low %v280_v30, %v290_v40  ;;  %v2905_v47 = vld [vmem:[#allocation4 + $0x148] ss:$16 sps:$4 sm:$0xff]   ;;  %v2602_v5 = vcombine.low %v1164_v4, %v1164_v4  ;;  %v2955_v32 = vld [vmem:[#allocation7 + $0x30] sm:$0xff]  }
  0x64   :  { %v1139_v39 = vsel %vm3375_vm7, %v1137_v37, %v1138_v28  ;;  %v2605_v22 = vcombine.high %v1165_v7, %v1165_v7  ;;  %v2604_v35 = vcombine.low %v1165_v7, %v1165_v7  ;;  %v2945_v24 = vld [vmem:[#allocation7 + $0x98] sm:$0xff]   ;;  %v2952_v19 = vld [vmem:[#allocation7 + $0xe8] sm:$0xff]   ;;  %v1608_v30 = vlaneseq }
  0x65   :  { %2512 = vmatmul.mubr.msk.bf16.gmra.mrb[20].mxu0 %vm424_vm3, %v2483_v31  ;;  %2521 = vmatmul.mubr.msk.bf16.gmra.mrb[20].mxu1 %vm424_vm3, %v2483_v31  ;;  %v1132_v31 = vsel %vm3375_vm7, %v1130_v38, %v1131_v21  ;;  %v3457_v44 = vcombine.low %v1136_v36, %v1139_v39  ;;  %v1146_v23 = vsel %vm3375_vm7, %v1144_v14, %v1145_v48  ;;  %v2944_v21 = vld [vmem:[#allocation7 + $0xd8] sm:$0xff]   ;;  %v2950_v38 = vld [vmem:[#allocation7 + $0x68] sm:$0xff]   ;;  %vm2045_vm8 = vcmask 1041409  }
  0x66   :  { %554 = vmatprep.mubr.bf16.mxu0 %v3040_v0  ;;  %667 = vmatprep.mubr.bf16.mxu1 %v3040_v0  ;;  %v3451_v33 = vcombine.low %v1129_v17, %v1132_v31  ;;  %v3477_v20 = vcombine.low %v1143_v2, %v1146_v23  ;;  %v1311_v10 = vsel %vm449_vm2, %v2604_v35, 0  ;;  %v2949_v17 = vld [vmem:[#allocation7 + $0xa0] sm:$0xff]   ;;  %v2951_v26 = vld [vmem:[#allocation7 + $0x28] sm:$0xff]   ;;  %v2956_v31 = vld [vmem:[#allocation7 + $0xf0] sm:$0xff]   ;;  %v3582_v40 = vshrl.u32 %v1608_v30, 7 }
  0x67   :  { %v2953_v28 = vld [vmem:[#allocation7 + $0xa8] sm:$0xff]   ;;  %v2958_v36 = vld [vmem:[#allocation7 + $0x78] sm:$0xff]   ;;  %vm2047_vm9 = vcmask 1042434   ;;  %vm2049_vm10 = vcmask 1043459   ;;  %vm2051_vm11 = vcmask 1044484   ;;  %vm2053_vm12 = vcmask 1045509  }
  0x68   :  { %v2959_v37 = vld [vmem:[#allocation7 + $0x38] sm:$0xff]   ;;  %v1610_v13 = vsub.s32 0, %v3582_v40  ;;  %v1618_v34 = vsub.s32 2, %v3582_v40  ;;  %v1614_v2 = vsub.s32 1, %v3582_v40  ;;  %v1622_v14 = vsub.s32 3, %v3582_v40 }
  0x69   :  { %v2960_v39 = vld [vmem:[#allocation7 + $0xf8] sm:$0xff]   ;;  %vm2055_vm13 = vcmask 1046534   ;;  %vm2057_vm14 = vcmask 1047559   ;;  %vm2460_vm15 = vcmask 57344  }
  0x6a   :  { %v1606_v48 = vld [vmem:[%s3869_s3] ss:$4 sm:$0xf] }
  0x6b   :  { %v3593_v23 = vrot.slane %v1606_v48, %v1618_v34 }
  0x6d   :  { %2513 = vmatmul.mubr.msk.bf16.gmra.mrb[24].mxu0 %vm424_vm3, %v2484_v29  ;;  %2522 = vmatmul.mubr.msk.bf16.gmra.mrb[24].mxu1 %vm424_vm3, %v2484_v29  ;;  %v2954_v29 = vld [vmem:[#allocation7 + $0x70] sm:$0xff]  }
  0x6e   :  { %564 = vmatprep.mubr.bf16.mxu0 %v3040_v0  ;;  %677 = vmatprep.mubr.bf16.mxu1 %v3040_v0 }
  0x75   :  { %2514 = vmatmul.mubr.msk.bf16.gmra.mrb[28].mxu0 %vm424_vm3, %v2485_v53  ;;  %2523 = vmatmul.mubr.msk.bf16.gmra.mrb[28].mxu1 %vm424_vm3, %v2485_v53  ;;  %v3591_v53 = vrot.slane %v1606_v48, %v1610_v13 }
  0x76   :  { %886 = vmatprep.mubr.bf16.mxu0 %v3040_v0  ;;  %999 = vmatprep.mubr.bf16.mxu1 %v3040_v0 }
  0x7d   :  { %2553 = vmatmul.mubr.msk.bf16.vlgmr.msra.gmra.mrb[0].mxu0 %vm424_vm3, %v3127_v42  ;;  %2562 = vmatmul.mubr.msk.bf16.vlgmr.msra.gmra.mrb[0].mxu1 %vm424_vm3, %v3127_v42  ;;  %v2923_v42 = vld [vmem:[#allocation4 + $0x18c] ss:$16 sps:$4 sm:$0xff]  }
  0x7e   :  { %1317 = vmatpush1.bf16.msra.mxu0 %v2895_v43  ;;  %1430 = vmatpush1.bf16.msra.mxu1 %v2898_v63  ;;  %v3597_v43 = vrot.slane %v1606_v48, %v1622_v14 }
  0x7f   :  { %896 = vmatprep.mubr.bf16.mxu0 %v3040_v0  ;;  %1009 = vmatprep.mubr.bf16.mxu1 %v3040_v0 }
  0x80   :  { %1318 = vmatprep.subr.bf16.mxu0 %v2904_v27  ;;  %1431 = vmatprep.subr.bf16.mxu1 %v2907_v50 }
  0x82   :  { %1319 = vmatpush1.bf16.msra.mxu0 %v2902_v25  ;;  %1432 = vmatpush1.bf16.msra.mxu1 %v2905_v47 }
  0x83   :  { %1320 = vmatprep.subr.bf16.mxu0 %v2912_v45  ;;  %1433 = vmatprep.subr.bf16.mxu1 %v2915_v58 }
  0x85   :  { %2554 = vmatmul.mubr.msk.bf16.gmra.mrb[4].mxu0 %vm424_vm3, %v3154_v57  ;;  %2563 = vmatmul.mubr.msk.bf16.gmra.mrb[4].mxu1 %vm424_vm3, %v3154_v57  ;;  %v1305_v57 = vsel %vm449_vm2, %v2602_v5, 0 }
  0x86   :  { %906 = vmatprep.mubr.bf16.mxu0 %v3040_v0  ;;  %1019 = vmatprep.mubr.bf16.mxu1 %v3040_v0 }
  0x87   :  { %1321 = vmatpush1.bf16.msra.mxu0 %v2910_v59  ;;  %1434 = vmatpush1.bf16.msra.mxu1 %v2913_v60 }
  0x88   :  { %1322 = vmatprep.subr.bf16.mxu0 %v2919_v46  ;;  %1435 = vmatprep.subr.bf16.mxu1 %v2923_v42 }
  0x8b   :  { %1323 = vmatpush1.bf16.msra.mxu0 %v2917_v1  ;;  %1436 = vmatpush1.bf16.msra.mxu1 %v2921_v3 }
  0x8c   :  { %2606 = vmatprep.subr.msk.bf16.mxu0 %vm449_vm2, %v2603_v16  ;;  %2615 = vmatprep.subr.msk.bf16.mxu1 %vm449_vm2, %v2605_v22 }
  0x8d   :  { %2555 = vmatmul.mubr.msk.bf16.gmra.mrb[8].mxu0 %vm424_vm3, %v3212_v49  ;;  %2564 = vmatmul.mubr.msk.bf16.gmra.mrb[8].mxu1 %vm424_vm3, %v3212_v49  ;;  %v2930_v49 = vld [vmem:[#allocation7 + $0x40] sm:$0xff]  }
  0x8e   :  { %916 = vmatprep.mubr.bf16.mxu0 %v3040_v0  ;;  %1029 = vmatprep.mubr.bf16.mxu1 %v3040_v0 }
  0x8f   :  { %1325 = vmatpush1.bf16.msra.mxu0 %v1305_v57  ;;  %1438 = vmatpush1.bf16.msra.mxu1 %v1311_v10 }
  0x90   :  { %2658 = vmatprep.subr.bf16.mxu0 %v2930_v49 }
  0x95   :  { %2556 = vmatmul.mubr.msk.bf16.gmra.mrb[12].mxu0 %vm424_vm3, %v3218_v54  ;;  %2565 = vmatmul.mubr.msk.bf16.gmra.mrb[12].mxu1 %vm424_vm3, %v3218_v54  ;;  %v2931_v54 = vld [vmem:[#allocation7] sm:$0xff]  }
  0x96   :  { %926 = vmatprep.mubr.bf16.mxu0 %v3040_v0  ;;  %1039 = vmatprep.mubr.bf16.mxu1 %v3040_v0 }
  0x9d   :  { %2557 = vmatmul.mubr.msk.bf16.gmra.mrb[16].mxu0 %vm424_vm3, %v3344_v52  ;;  %2566 = vmatmul.mubr.msk.bf16.gmra.mrb[16].mxu1 %vm424_vm3, %v3344_v52  ;;  %v2932_v52 = vld [vmem:[#allocation7 + $0xc0] sm:$0xff]  }
  0x9e   :  { %936 = vmatprep.mubr.bf16.mxu0 %v3040_v0  ;;  %1049 = vmatprep.mubr.bf16.mxu1 %v3040_v0 }
  0x9f   :  { %2680 = vmatprep.subr.bf16.mxu1 %v2932_v52 }
  0xa5   :  { %2558 = vmatmul.mubr.msk.bf16.gmra.mrb[20].mxu0 %vm424_vm3, %v3352_v61  ;;  %2567 = vmatmul.mubr.msk.bf16.gmra.mrb[20].mxu1 %vm424_vm3, %v3352_v61  ;;  %v2933_v61 = vld [vmem:[#allocation7 + $0x80] sm:$0xff]  }
  0xa6   :  { %946 = vmatprep.mubr.bf16.mxu0 %v3040_v0  ;;  %1059 = vmatprep.mubr.bf16.mxu1 %v3040_v0 }
  0xad   :  { %2559 = vmatmul.mubr.msk.bf16.gmra.mrb[24].mxu0 %vm424_vm3, %v3356_v62  ;;  %2568 = vmatmul.mubr.msk.bf16.gmra.mrb[24].mxu1 %vm424_vm3, %v3356_v62  ;;  %v2934_v62 = vld [vmem:[#allocation7 + $0x48] sm:$0xff]  }
  0xae   :  { %956 = vmatprep.mubr.bf16.mxu0 %v3040_v0  ;;  %1069 = vmatprep.mubr.bf16.mxu1 %v3040_v0 }
  0xb5   :  { %2560 = vmatmul.mubr.msk.bf16.gmra.mrb[28].mxu0 %vm424_vm3, %v3363_v6  ;;  %2569 = vmatmul.mubr.msk.bf16.gmra.mrb[28].mxu1 %vm424_vm3, %v3363_v6  ;;  %v2935_v6 = vld [vmem:[#allocation7 + $0x8] sm:$0xff]  }
  0xb6   :  { %1348 = vmatprep.mubr.bf16.mxu0 %v3040_v0  ;;  %1461 = vmatprep.mubr.bf16.mxu1 %v3040_v0 }
  0xbd   :  { %2607 = vmatmul.mubr.msk.bf16.vlgmr.msra.gmra.mrb[0].mxu0 %vm424_vm3, %v3398_v41  ;;  %2616 = vmatmul.mubr.msk.bf16.vlgmr.msra.gmra.mrb[0].mxu1 %vm424_vm3, %v3398_v41  ;;  %v2936_v41 = vld [vmem:[#allocation7 + $0xc8] sm:$0xff]  }
  0xbe   :  { %1358 = vmatprep.mubr.bf16.mxu0 %v3040_v0  ;;  %1471 = vmatprep.mubr.bf16.mxu1 %v3040_v0 }
  0xbf   :  { %2659 = vmatpush3.bf16.msra.mxu0 %v2931_v54  ;;  %2681 = vmatpush3.bf16.msra.mxu1 %v2933_v61 }
  0xc0   :  { %2660 = vmatprep.subr.bf16.mxu0 %v2934_v62  ;;  %2682 = vmatprep.subr.bf16.mxu1 %v2936_v41 }
  0xc3   :  { %2661 = vmatpush3.bf16.msra.mxu0 %v2935_v6 }
  0xc5   :  { %2608 = vmatmul.mubr.msk.bf16.gmra.mrb[4].mxu0 %vm424_vm3, %v3416_v8  ;;  %2617 = vmatmul.mubr.msk.bf16.gmra.mrb[4].mxu1 %vm424_vm3, %v3416_v8  ;;  %v2937_v8 = vld [vmem:[#allocation7 + $0x88] sm:$0xff]  }
  0xc6   :  { %1368 = vmatprep.mubr.bf16.mxu0 %v3040_v0  ;;  %1481 = vmatprep.mubr.bf16.mxu1 %v3040_v0 }
  0xc7   :  { %2683 = vmatpush3.bf16.msra.mxu1 %v2937_v8 }
  0xc8   :  { %2684 = vmatprep.subr.bf16.mxu1 %v2940_v55 }
  0xcb   :  { %2685 = vmatpush3.bf16.msra.mxu1 %v2941_v56 }
  0xcc   :  { %2686 = vmatprep.subr.bf16.mxu1 %v2944_v21 }
  0xcd   :  { %2609 = vmatmul.mubr.msk.bf16.gmra.mrb[8].mxu0 %vm424_vm3, %v3422_v51  ;;  %2618 = vmatmul.mubr.msk.bf16.gmra.mrb[8].mxu1 %vm424_vm3, %v3422_v51  ;;  %v2939_v51 = vld [vmem:[#allocation7 + $0x10] sm:$0xff]  }
  0xce   :  { %1378 = vmatprep.mubr.bf16.mxu0 %v3040_v0  ;;  %1491 = vmatprep.mubr.bf16.mxu1 %v3040_v0 }
  0xcf   :  { %2687 = vmatpush3.bf16.msra.mxu1 %v2945_v24 }
  0xd0   :  { %2688 = vmatprep.subr.bf16.mxu1 %v2948_v11 }
  0xd3   :  { %2689 = vmatpush3.bf16.msra.mxu1 %v2949_v17 }
  0xd4   :  { %2690 = vmatprep.subr.bf16.mxu1 %v2952_v19 }
  0xd5   :  { %2610 = vmatmul.mubr.msk.bf16.gmra.mrb[12].mxu0 %vm424_vm3, %v3436_v15  ;;  %2619 = vmatmul.mubr.msk.bf16.gmra.mrb[12].mxu1 %vm424_vm3, %v3436_v15  ;;  %v2946_v15 = vld [vmem:[#allocation7 + $0x60] sm:$0xff]  }
  0xd6   :  { %1388 = vmatprep.mubr.bf16.mxu0 %v3040_v0  ;;  %1501 = vmatprep.mubr.bf16.mxu1 %v3040_v0 }
  0xd7   :  { %2691 = vmatpush3.bf16.msra.mxu1 %v2953_v28 }
  0xd8   :  { %2692 = vmatprep.subr.bf16.mxu1 %v2956_v31 }
  0xdd   :  { %2611 = vmatmul.mubr.msk.bf16.gmra.mrb[16].mxu0 %vm424_vm3, %v3442_v18  ;;  %2620 = vmatmul.mubr.msk.bf16.gmra.mrb[16].mxu1 %vm424_vm3, %v3442_v18  ;;  %v2947_v18 = vld [vmem:[#allocation7 + $0x20] sm:$0xff]  }
  0xde   :  { %1398 = vmatprep.mubr.bf16.mxu0 %v3040_v0  ;;  %1511 = vmatprep.mubr.bf16.mxu1 %v3040_v0 }
  0xe5   :  { %2612 = vmatmul.mubr.msk.bf16.gmra.mrb[20].mxu0 %vm424_vm3, %v3451_v33  ;;  %2621 = vmatmul.mubr.msk.bf16.gmra.mrb[20].mxu1 %vm424_vm3, %v3451_v33  ;;  %v2957_v33 = vld [vmem:[#allocation7 + $0xb0] sm:$0xff]  }
  0xe6   :  { %1408 = vmatprep.mubr.bf16.mxu0 %v3040_v0  ;;  %1521 = vmatprep.mubr.bf16.mxu1 %v3040_v0 }
  0xe7   :  { %2693 = vmatpush3.bf16.msra.mxu1 %v2957_v33 }
  0xe8   :  { %2694 = vmatprep.subr.bf16.mxu1 %v2960_v39 }
  0xed   :  { %2613 = vmatmul.mubr.msk.bf16.gmra.mrb[24].mxu0 %vm424_vm3, %v3457_v44  ;;  %2622 = vmatmul.mubr.msk.bf16.gmra.mrb[24].mxu1 %vm424_vm3, %v3457_v44  ;;  %v2961_v44 = vld [vmem:[#allocation7 + $0xb8] sm:$0xff]  }
  0xee   :  { %1418 = vmatprep.mubr.bf16.mxu0 %v3040_v0  ;;  %1531 = vmatprep.mubr.bf16.mxu1 %v3040_v0  ;;  %v2938_v0 = vld [vmem:[#allocation7 + $0x50] sm:$0xff]  }
  0xef   :  { %2662 = vmatprep.subr.bf16.mxu0 %v2938_v0  ;;  %2695 = vmatpush3.bf16.msra.mxu1 %v2961_v44 }
  0xf0   :  { %2663 = vmatpush3.bf16.msra.mxu0 %v2939_v51 }
  0xf1   :  { %2664 = vmatprep.subr.bf16.mxu0 %v2942_v9 }
  0xf4   :  { %2665 = vmatpush3.bf16.msra.mxu0 %v2943_v12 }
  0xf5   :  { %2614 = vmatmul.mubr.msk.bf16.gmra.mrb[28].mxu0 %vm424_vm3, %v3477_v20  ;;  %2623 = vmatmul.mubr.msk.bf16.gmra.mrb[28].mxu1 %vm424_vm3, %v3477_v20  ;;  %v3595_v20 = vrot.slane %v1606_v48, %v1614_v2 }
  0xf6   :  { %2666 = vmatprep.subr.bf16.mxu0 %v2946_v15 }
  0xf8   :  { %2667 = vmatpush3.bf16.msra.mxu0 %v2947_v18 }
  0xf9   :  { %2668 = vmatprep.subr.bf16.mxu0 %v2950_v38 }
  0xfc   :  { %2669 = vmatpush3.bf16.msra.mxu0 %v2951_v26 }
  0xfd   :  { %2670 = vmatprep.subr.bf16.mxu0 %v2954_v29 }
 0x100   :  { %2671 = vmatpush3.bf16.msra.mxu0 %v2955_v32 }
 0x101   :  { %2672 = vmatprep.subr.bf16.mxu0 %v2958_v36 }
 0x104   :  { %2673 = vmatpush3.bf16.msra.mxu0 %v2959_v37 }
 0x190   :  { %v1350_v63 = vpop.f32.mrb[0].mxu0  ;;  %v1463_v27 = vpop.f32.mrb[0].mxu1 }
 0x191   :  { %v1628_v50 = vadd.f32 %v3591_v53, %v1350_v63  ;;  %v1630_v25 = vadd.f32 %v3593_v23, %v1463_v27  ;;  %v1352_v47 = vpop.f32.mrb[1].mxu0  ;;  %v1465_v45 = vpop.f32.mrb[1].mxu1 }
 0x192   :  { %v1629_v58 = vadd.f32 %v3595_v20, %v1352_v47  ;;  %v1631_v59 = vadd.f32 %v3597_v43, %v1465_v45  ;;  %v1354_v60 = vpop.f32.mrb[2].mxu0  ;;  %v1467_v46 = vpop.f32.mrb[2].mxu1 }
 0x193   :  { %v1632_v42 = vadd.f32 %v3591_v53, %v1354_v60  ;;  %v1634_v4 = vadd.f32 %v3593_v23, %v1467_v46  ;;  %v1356_v7 = vpop.f32.mrb[3].mxu0  ;;  %v1469_v1 = vpop.f32.mrb[3].mxu1  ;;  %v1692_v5 = vmax.f32 %v1628_v50, 0.0  ;;  %v1694_v22 = vmax.f32 %v1630_v25, 0.0 }
 0x194   :  { %v1633_v3 = vadd.f32 %v3595_v20, %v1356_v7  ;;  %v1635_v16 = vadd.f32 %v3597_v43, %v1469_v1  ;;  %v1693_v10 = vmax.f32 %v1629_v58, 0.0  ;;  %v1695_v49 = vmax.f32 %v1631_v59, 0.0 }
 0x195   :  { %v1696_v35 = vmax.f32 %v1632_v42, 0.0  ;;  %v1698_v57 = vmax.f32 %v1634_v4, 0.0 }
 0x196   :  { %v1697_v54 = vmax.f32 %v1633_v3, 0.0  ;;  %v1699_v52 = vmax.f32 %v1635_v16, 0.0 }
 0x197   :  { %v1756_v61 = vadd.f32 %v1696_v35, %v1692_v5  ;;  %v1770_v62 = vadd.f32 %v1698_v57, %v1694_v22 }
 0x198   :  { %v1763_v6 = vadd.f32 %v1697_v54, %v1693_v10  ;;  %v1777_v41 = vadd.f32 %v1699_v52, %v1695_v49  ;;  %v1360_v8 = vpop.f32.mrb[4].mxu0  ;;  %v1473_v0 = vpop.f32.mrb[4].mxu1 }
 0x199   :  { %v1757_v51 = vrot.slane %v1756_v61, 4  ;;  %v1771_v55 = vrot.slane %v1770_v62, 4  ;;  %v1636_v56 = vadd.f32 %v3591_v53, %v1360_v8  ;;  %v1638_v9 = vadd.f32 %v3593_v23, %v1473_v0  ;;  %v1362_v12 = vpop.f32.mrb[5].mxu0  ;;  %v1475_v21 = vpop.f32.mrb[5].mxu1 }
 0x19a   :  { %v1764_v24 = vrot.slane %v1763_v6, 4  ;;  %v1778_v15 = vrot.slane %v1777_v41, 4  ;;  %v1637_v11 = vadd.f32 %v3595_v20, %v1362_v12  ;;  %v1639_v18 = vadd.f32 %v3597_v43, %v1475_v21  ;;  %v1364_v17 = vpop.f32.mrb[6].mxu0  ;;  %v1477_v38 = vpop.f32.mrb[6].mxu1 }
 0x19b   :  { %v1758_v19 = vadd.f32 %v1757_v51, %v1756_v61  ;;  %v1772_v26 = vadd.f32 %v1771_v55, %v1770_v62  ;;  %v1700_v28 = vmax.f32 %v1636_v56, 0.0  ;;  %v1702_v29 = vmax.f32 %v1638_v9, 0.0  ;;  %v1366_v31 = vpop.f32.mrb[7].mxu0  ;;  %v1479_v32 = vpop.f32.mrb[7].mxu1 }
 0x19c   :  { %v1765_v33 = vadd.f32 %v1764_v24, %v1763_v6  ;;  %v1779_v36 = vadd.f32 %v1778_v15, %v1777_v41  ;;  %v1701_v37 = vmax.f32 %v1637_v11, 0.0  ;;  %v1703_v39 = vmax.f32 %v1639_v18, 0.0 }
 0x19d   :  { %v1759_v44 = vrot.slane %v1758_v19, 2  ;;  %v1773_v13 = vrot.slane %v1772_v26, 2  ;;  %v1640_v34 = vadd.f32 %v3591_v53, %v1364_v17  ;;  %v1642_v48 = vadd.f32 %v3593_v23, %v1477_v38 }
 0x19e   :  { %v1766_v2 = vrot.slane %v1765_v33, 2  ;;  %v1780_v14 = vrot.slane %v1779_v36, 2  ;;  %v1641_v63 = vadd.f32 %v3595_v20, %v1366_v31  ;;  %v1643_v27 = vadd.f32 %v3597_v43, %v1479_v32 }
 0x19f   :  { %v1760_v50 = vadd.f32 %v1759_v44, %v1758_v19  ;;  %v1774_v25 = vadd.f32 %v1773_v13, %v1772_v26  ;;  %v1704_v47 = vmax.f32 %v1640_v34, 0.0  ;;  %v1706_v45 = vmax.f32 %v1642_v48, 0.0 }
 0x1a0   :  { %v1767_v58 = vadd.f32 %v1766_v2, %v1765_v33  ;;  %v1781_v59 = vadd.f32 %v1780_v14, %v1779_v36  ;;  %v1705_v60 = vmax.f32 %v1641_v63, 0.0  ;;  %v1707_v46 = vmax.f32 %v1643_v27, 0.0  ;;  %v1370_v42 = vpop.f32.mrb[8].mxu0  ;;  %v1483_v4 = vpop.f32.mrb[8].mxu1 }
 0x1a1   :  { %v1761_v7 = vrot.slane %v1760_v50, 1  ;;  %v1775_v1 = vrot.slane %v1774_v25, 1  ;;  %v1784_v3 = vadd.f32 %v1704_v47, %v1700_v28  ;;  %v1798_v16 = vadd.f32 %v1706_v45, %v1702_v29  ;;  %v1372_v5 = vpop.f32.mrb[9].mxu0  ;;  %v1485_v22 = vpop.f32.mrb[9].mxu1 }
 0x1a2   :  { %v1768_v35 = vrot.slane %v1767_v58, 1  ;;  %v1782_v57 = vrot.slane %v1781_v59, 1  ;;  %v1791_v10 = vadd.f32 %v1705_v60, %v1701_v37  ;;  %v1805_v49 = vadd.f32 %v1707_v46, %v1703_v39  ;;  %v1374_v54 = vpop.f32.mrb[10].mxu0  ;;  %v1487_v52 = vpop.f32.mrb[10].mxu1 }
 0x1a3   :  { %v1762_v61 = vadd.f32 %v1761_v7, %v1760_v50  ;;  %v1776_v62 = vadd.f32 %v1775_v1, %v1774_v25  ;;  %v1785_v6 = vrot.slane %v1784_v3, 4  ;;  %v1799_v41 = vrot.slane %v1798_v16, 4  ;;  %v1376_v8 = vpop.f32.mrb[11].mxu0  ;;  %v1489_v0 = vpop.f32.mrb[11].mxu1 }
 0x1a4   :  { %v1769_v51 = vadd.f32 %v1768_v35, %v1767_v58  ;;  %v1783_v55 = vadd.f32 %v1782_v57, %v1781_v59  ;;  %v1792_v56 = vrot.slane %v1791_v10, 4  ;;  %v1806_v9 = vrot.slane %v1805_v49, 4 }
 0x1a5   :  { %v1981_v12 = vmul.f32 0.0625, %v1762_v61  ;;  %v1983_v21 = vmul.f32 0.0625, %v1776_v62  ;;  %v1786_v24 = vadd.f32 %v1785_v6, %v1784_v3  ;;  %v1800_v15 = vadd.f32 %v1799_v41, %v1798_v16 }
 0x1a6   :  { %v1982_v11 = vmul.f32 0.0625, %v1769_v51  ;;  %v1984_v18 = vmul.f32 0.0625, %v1783_v55  ;;  %v1793_v17 = vadd.f32 %v1792_v56, %v1791_v10  ;;  %v1807_v38 = vadd.f32 %v1806_v9, %v1805_v49 }
 0x1a7   :  { %v1787_v19 = vrot.slane %v1786_v24, 2  ;;  %v1801_v26 = vrot.slane %v1800_v15, 2  ;;  %v1644_v28 = vadd.f32 %v3591_v53, %v1370_v42  ;;  %v1646_v29 = vadd.f32 %v3593_v23, %v1483_v4 }
 0x1a8   :  { %v1794_v31 = vrot.slane %v1793_v17, 2  ;;  %v1808_v32 = vrot.slane %v1807_v38, 2  ;;  %v1645_v33 = vadd.f32 %v3595_v20, %v1372_v5  ;;  %v1647_v36 = vadd.f32 %v3597_v43, %v1485_v22  ;;  %v1380_v37 = vpop.f32.mrb[12].mxu0  ;;  %v1493_v39 = vpop.f32.mrb[12].mxu1 }
 0x1a9   :  { %v1788_v44 = vadd.f32 %v1787_v19, %v1786_v24  ;;  %v1802_v13 = vadd.f32 %v1801_v26, %v1800_v15  ;;  %v1708_v34 = vmax.f32 %v1644_v28, 0.0  ;;  %v1710_v48 = vmax.f32 %v1646_v29, 0.0  ;;  %v1382_v2 = vpop.f32.mrb[13].mxu0  ;;  %v1495_v14 = vpop.f32.mrb[13].mxu1 }
 0x1aa   :  { %v1795_v63 = vadd.f32 %v1794_v31, %v1793_v17  ;;  %v1809_v27 = vadd.f32 %v1808_v32, %v1807_v38  ;;  %v1709_v50 = vmax.f32 %v1645_v33, 0.0  ;;  %v1711_v25 = vmax.f32 %v1647_v36, 0.0  ;;  %v3619_v47 = vpop.f32.mrb[14].mxu0  ;;  %v3621_v45 = vpop.f32.mrb[14].mxu1 }
 0x1ab   :  { %v1789_v58 = vrot.slane %v1788_v44, 1  ;;  %v1803_v59 = vrot.slane %v1802_v13, 1  ;;  %v1648_v60 = vadd.f32 %v3591_v53, %v1374_v54  ;;  %v1650_v46 = vadd.f32 %v3593_v23, %v1487_v52  ;;  %v1386_v42 = vpop.f32.mrb[15].mxu0  ;;  %v1499_v4 = vpop.f32.mrb[15].mxu1 }
 0x1ac   :  { %v1796_v7 = vrot.slane %v1795_v63, 1  ;;  %v1810_v1 = vrot.slane %v1809_v27, 1  ;;  %v1649_v3 = vadd.f32 %v3595_v20, %v1376_v8  ;;  %v1651_v16 = vadd.f32 %v3597_v43, %v1489_v0 }
 0x1ad   :  { %v1790_v5 = vadd.f32 %v1789_v58, %v1788_v44  ;;  %v1804_v22 = vadd.f32 %v1803_v59, %v1802_v13  ;;  %v1712_v35 = vmax.f32 %v1648_v60, 0.0  ;;  %v1714_v57 = vmax.f32 %v1650_v46, 0.0 }
 0x1ae   :  { %v1797_v10 = vadd.f32 %v1796_v7, %v1795_v63  ;;  %v1811_v49 = vadd.f32 %v1810_v1, %v1809_v27  ;;  %v1713_v61 = vmax.f32 %v1649_v3, 0.0  ;;  %v1715_v62 = vmax.f32 %v1651_v16, 0.0 }
 0x1af   :  { %v1985_v6 = vmul.f32 0.0625, %v1790_v5  ;;  %v1987_v54 = vmul.f32 0.0625, %v1804_v22  ;;  %v1812_v41 = vadd.f32 %v1712_v35, %v1708_v34  ;;  %v1826_v52 = vadd.f32 %v1714_v57, %v1710_v48 }
 0x1b0   :  { %v1986_v51 = vmul.f32 0.0625, %v1797_v10  ;;  %v1988_v55 = vmul.f32 0.0625, %v1811_v49  ;;  %v1819_v56 = vadd.f32 %v1713_v61, %v1709_v50  ;;  %v1833_v9 = vadd.f32 %v1715_v62, %v1711_v25  ;;  %v3627_v24 = vpop.f32.mrb[16].mxu0  ;;  %v3629_v8 = vpop.f32.mrb[16].mxu1 }
 0x1b1   :  { %v3632_v0 = vsel %vm2045_vm8, %v1985_v6, %v1981_v12  ;;  %v3635_v15 = vsel %vm2045_vm8, %v1987_v54, %v1983_v21  ;;  %v1813_v17 = vrot.slane %v1812_v41, 4  ;;  %v1827_v38 = vrot.slane %v1826_v52, 4  ;;  %v3637_v19 = vpop.f32.mrb[17].mxu0  ;;  %v3639_v26 = vpop.f32.mrb[17].mxu1 }
 0x1b2   :  { %v3642_v28 = vsel %vm2045_vm8, %v1986_v51, %v1982_v11  ;;  %v3645_v29 = vsel %vm2045_vm8, %v1988_v55, %v1984_v18  ;;  %v1820_v31 = vrot.slane %v1819_v56, 4  ;;  %v1834_v32 = vrot.slane %v1833_v9, 4  ;;  %v3647_v33 = vpop.f32.mrb[18].mxu0  ;;  %v3649_v12 = vpop.f32.mrb[18].mxu1 }
 0x1b3   :  { %v1814_v21 = vadd.f32 %v1813_v17, %v1812_v41  ;;  %v1828_v36 = vadd.f32 %v1827_v38, %v1826_v52  ;;  %v1652_v44 = vadd.f32 %v3591_v53, %v1380_v37  ;;  %v1654_v13 = vadd.f32 %v3593_v23, %v1493_v39  ;;  %v3653_v34 = vpop.f32.mrb[19].mxu0  ;;  %v3655_v48 = vpop.f32.mrb[19].mxu1 }
 0x1b4   :  { %v1821_v11 = vadd.f32 %v1820_v31, %v1819_v56  ;;  %v1835_v18 = vadd.f32 %v1834_v32, %v1833_v9  ;;  %v1653_v63 = vadd.f32 %v3595_v20, %v1382_v2  ;;  %v1655_v27 = vadd.f32 %v3597_v43, %v1495_v14 }
 0x1b5   :  { %v1815_v50 = vrot.slane %v1814_v21, 2  ;;  %v1829_v25 = vrot.slane %v1828_v36, 2  ;;  %v1716_v58 = vmax.f32 %v1652_v44, 0.0  ;;  %v1718_v59 = vmax.f32 %v1654_v13, 0.0 }
 0x1b6   :  { %v1822_v60 = vrot.slane %v1821_v11, 2  ;;  %v1836_v46 = vrot.slane %v1835_v18, 2  ;;  %v1717_v37 = vmax.f32 %v1653_v63, 0.0  ;;  %v1719_v7 = vmax.f32 %v1655_v27, 0.0 }
 0x1b7   :  { %v1816_v39 = vadd.f32 %v1815_v50, %v1814_v21  ;;  %v1830_v1 = vadd.f32 %v1829_v25, %v1828_v36  ;;  %v1656_v3 = vadd.f32 %v3591_v53, %v3619_v47  ;;  %v1658_v16 = vadd.f32 %v3593_v23, %v3621_v45 }
 0x1b8   :  { %v1823_v5 = vadd.f32 %v1822_v60, %v1821_v11  ;;  %v1837_v2 = vadd.f32 %v1836_v46, %v1835_v18  ;;  %v1657_v14 = vadd.f32 %v3595_v20, %v1386_v42  ;;  %v1659_v22 = vadd.f32 %v3597_v43, %v1499_v4  ;;  %v3665_v35 = vpop.f32.mrb[20].mxu0  ;;  %v3667_v57 = vpop.f32.mrb[20].mxu1 }
 0x1b9   :  { %v1817_v10 = vrot.slane %v1816_v39, 1  ;;  %v1831_v49 = vrot.slane %v1830_v1, 1  ;;  %v1720_v61 = vmax.f32 %v1656_v3, 0.0  ;;  %v1722_v62 = vmax.f32 %v1658_v16, 0.0  ;;  %v3669_v6 = vpop.f32.mrb[21].mxu0  ;;  %v3671_v47 = vpop.f32.mrb[21].mxu1 }
 0x1ba   :  { %v1824_v54 = vrot.slane %v1823_v5, 1  ;;  %v1838_v45 = vrot.slane %v1837_v2, 1  ;;  %v1721_v41 = vmax.f32 %v1657_v14, 0.0  ;;  %v1723_v52 = vmax.f32 %v1659_v22, 0.0  ;;  %v3673_v51 = vpop.f32.mrb[22].mxu0  ;;  %v3675_v42 = vpop.f32.mrb[22].mxu1 }
 0x1bb   :  { %v1818_v4 = vadd.f32 %v1817_v10, %v1816_v39  ;;  %v1832_v55 = vadd.f32 %v1831_v49, %v1830_v1  ;;  %v1840_v56 = vadd.f32 %v1720_v61, %v1716_v58  ;;  %v1854_v9 = vadd.f32 %v1722_v62, %v1718_v59  ;;  %v3677_v17 = vpop.f32.mrb[23].mxu0  ;;  %v3679_v38 = vpop.f32.mrb[23].mxu1 }
 0x1bc   :  { %v1825_v31 = vadd.f32 %v1824_v54, %v1823_v5  ;;  %v1839_v32 = vadd.f32 %v1838_v45, %v1837_v2  ;;  %v1847_v21 = vadd.f32 %v1721_v41, %v1717_v37  ;;  %v1861_v36 = vadd.f32 %v1723_v52, %v1719_v7 }
 0x1bd   :  { %v1989_v44 = vmul.f32 0.0625, %v1818_v4  ;;  %v1991_v13 = vmul.f32 0.0625, %v1832_v55  ;;  %v1841_v11 = vrot.slane %v1840_v56, 4  ;;  %v1855_v18 = vrot.slane %v1854_v9, 4 }
 0x1be   :  { %v1990_v63 = vmul.f32 0.0625, %v1825_v31  ;;  %v1992_v27 = vmul.f32 0.0625, %v1839_v32  ;;  %v1848_v50 = vrot.slane %v1847_v21, 4  ;;  %v1862_v25 = vrot.slane %v1861_v36, 4 }
 0x1bf   :  { %v3683_v58 = vsel %vm2047_vm9, %v1989_v44, %v3632_v0  ;;  %v3687_v59 = vsel %vm2047_vm9, %v1991_v13, %v3635_v15  ;;  %v1842_v60 = vadd.f32 %v1841_v11, %v1840_v56  ;;  %v1856_v46 = vadd.f32 %v1855_v18, %v1854_v9 }
 0x1c0   :  { %v3691_v37 = vsel %vm2047_vm9, %v1990_v63, %v3642_v28  ;;  %v3695_v7 = vsel %vm2047_vm9, %v1992_v27, %v3645_v29  ;;  %v1849_v39 = vadd.f32 %v1848_v50, %v1847_v21  ;;  %v1863_v1 = vadd.f32 %v1862_v25, %v1861_v36  ;;  %v3697_v3 = vpop.f32.mrb[24].mxu0  ;;  %v3699_v0 = vpop.f32.mrb[24].mxu1 }
 0x1c1   :  { %v1843_v16 = vrot.slane %v1842_v60, 2  ;;  %v1857_v15 = vrot.slane %v1856_v46, 2  ;;  %v1660_v5 = vadd.f32 %v3591_v53, %v3627_v24  ;;  %v1662_v28 = vadd.f32 %v3593_v23, %v3629_v8  ;;  %v3705_v2 = vpop.f32.mrb[25].mxu0  ;;  %v3707_v14 = vpop.f32.mrb[25].mxu1 }
 0x1c2   :  { %v1850_v29 = vrot.slane %v1849_v39, 2  ;;  %v1864_v22 = vrot.slane %v1863_v1, 2  ;;  %v1661_v10 = vadd.f32 %v3595_v20, %v3637_v19  ;;  %v1663_v49 = vadd.f32 %v3597_v43, %v3639_v26  ;;  %v3713_v61 = vpop.f32.mrb[26].mxu0  ;;  %v3715_v62 = vpop.f32.mrb[26].mxu1 }
 0x1c3   :  { %v1844_v24 = vadd.f32 %v1843_v16, %v1842_v60  ;;  %v1858_v54 = vadd.f32 %v1857_v15, %v1856_v46  ;;  %v1724_v45 = vmax.f32 %v1660_v5, 0.0  ;;  %v1726_v8 = vmax.f32 %v1662_v28, 0.0  ;;  %v3717_v41 = vpop.f32.mrb[27].mxu0  ;;  %v3719_v52 = vpop.f32.mrb[27].mxu1 }
 0x1c4   :  { %v1851_v4 = vadd.f32 %v1850_v29, %v1849_v39  ;;  %v1865_v55 = vadd.f32 %v1864_v22, %v1863_v1  ;;  %v1725_v56 = vmax.f32 %v1661_v10, 0.0  ;;  %v1727_v9 = vmax.f32 %v1663_v49, 0.0 }
 0x1c5   :  { %v1845_v19 = vrot.slane %v1844_v24, 1  ;;  %v1859_v31 = vrot.slane %v1858_v54, 1  ;;  %v1664_v26 = vadd.f32 %v3591_v53, %v3647_v33  ;;  %v1666_v32 = vadd.f32 %v3593_v23, %v3649_v12 }
 0x1c6   :  { %v1852_v21 = vrot.slane %v1851_v4, 1  ;;  %v1866_v36 = vrot.slane %v1865_v55, 1  ;;  %v1665_v44 = vadd.f32 %v3595_v20, %v3653_v34  ;;  %v1667_v13 = vadd.f32 %v3597_v43, %v3655_v48 }
 0x1c7   :  { %v1846_v11 = vadd.f32 %v1845_v19, %v1844_v24  ;;  %v1860_v18 = vadd.f32 %v1859_v31, %v1858_v54  ;;  %v1728_v63 = vmax.f32 %v1664_v26, 0.0  ;;  %v1730_v27 = vmax.f32 %v1666_v32, 0.0 }
 0x1c8   :  { %v1853_v50 = vadd.f32 %v1852_v21, %v1851_v4  ;;  %v1867_v25 = vadd.f32 %v1866_v36, %v1865_v55  ;;  %v1729_v60 = vmax.f32 %v1665_v44, 0.0  ;;  %v1731_v46 = vmax.f32 %v1667_v13, 0.0  ;;  %v3729_v33 = vpop.f32.mrb[28].mxu0  ;;  %v3731_v39 = vpop.f32.mrb[28].mxu1 }
 0x1c9   :  { %v1993_v12 = vmul.f32 0.0625, %v1846_v11  ;;  %v1995_v1 = vmul.f32 0.0625, %v1860_v18  ;;  %v1868_v16 = vadd.f32 %v1728_v63, %v1724_v45  ;;  %v1882_v15 = vadd.f32 %v1730_v27, %v1726_v8  ;;  %v3733_v34 = vpop.f32.mrb[29].mxu0  ;;  %v3735_v5 = vpop.f32.mrb[29].mxu1 }
 0x1ca   :  { %v3737_v48 = vmul.f32 0.0625, %v1853_v50  ;;  %v3739_v28 = vmul.f32 0.0625, %v1867_v25  ;;  %v1875_v29 = vadd.f32 %v1729_v60, %v1725_v56  ;;  %v1889_v22 = vadd.f32 %v1731_v46, %v1727_v9  ;;  %v3741_v10 = vpop.f32.mrb[30].mxu0  ;;  %v3743_v49 = vpop.f32.mrb[30].mxu1 }
 0x1cb   :  { %v2050_v24 = vsel %vm2049_vm10, %v1993_v12, %v3683_v58  ;;  %v2068_v54 = vsel %vm2049_vm10, %v1995_v1, %v3687_v59  ;;  %v1869_v45 = vrot.slane %v1868_v16, 4  ;;  %v1883_v8 = vrot.slane %v1882_v15, 4  ;;  %v3749_v4 = vpop.f32.mrb[31].mxu0  ;;  %v3751_v55 = vpop.f32.mrb[31].mxu1 }
 0x1cc   :  { %v1876_v19 = vrot.slane %v1875_v29, 4  ;;  %v1890_v31 = vrot.slane %v1889_v22, 4  ;;  %v1668_v56 = vadd.f32 %v3591_v53, %v3665_v35  ;;  %v1670_v9 = vadd.f32 %v3593_v23, %v3667_v57 }
 0x1cd   :  { %v1870_v26 = vadd.f32 %v1869_v45, %v1868_v16  ;;  %v1884_v32 = vadd.f32 %v1883_v8, %v1882_v15  ;;  %v1669_v58 = vadd.f32 %v3595_v20, %v3669_v6  ;;  %v1671_v59 = vadd.f32 %v3597_v43, %v3671_v47 }
 0x1ce   :  { %v1877_v21 = vadd.f32 %v1876_v19, %v1875_v29  ;;  %v1891_v36 = vadd.f32 %v1890_v31, %v1889_v22  ;;  %v1732_v44 = vmax.f32 %v1668_v56, 0.0  ;;  %v1734_v13 = vmax.f32 %v1670_v9, 0.0 }
 0x1cf   :  { %v1871_v11 = vrot.slane %v1870_v26, 2  ;;  %v1885_v18 = vrot.slane %v1884_v32, 2  ;;  %v1733_v63 = vmax.f32 %v1669_v58, 0.0  ;;  %v1735_v35 = vmax.f32 %v1671_v59, 0.0 }
 0x1d0   :  { %v1878_v27 = vrot.slane %v1877_v21, 2  ;;  %v1892_v50 = vrot.slane %v1891_v36, 2  ;;  %v1672_v57 = vadd.f32 %v3591_v53, %v3673_v51  ;;  %v1674_v6 = vadd.f32 %v3593_v23, %v3675_v42 }
 0x1d1   :  { %v1872_v25 = vadd.f32 %v1871_v11, %v1870_v26  ;;  %v1886_v60 = vadd.f32 %v1885_v18, %v1884_v32  ;;  %v1673_v47 = vadd.f32 %v3595_v20, %v3677_v17  ;;  %v1675_v46 = vadd.f32 %v3597_v43, %v3679_v38 }
 0x1d2   :  { %v1879_v12 = vadd.f32 %v1878_v27, %v1877_v21  ;;  %v1893_v1 = vadd.f32 %v1892_v50, %v1891_v36  ;;  %v1736_v16 = vmax.f32 %v1672_v57, 0.0  ;;  %v1738_v15 = vmax.f32 %v1674_v6, 0.0 }
 0x1d3   :  { %v1873_v29 = vrot.slane %v1872_v25, 1  ;;  %v1887_v22 = vrot.slane %v1886_v60, 1  ;;  %v1737_v45 = vmax.f32 %v1673_v47, 0.0  ;;  %v1739_v8 = vmax.f32 %v1675_v46, 0.0 }
 0x1d4   :  { %v1880_v51 = vrot.slane %v1879_v12, 1  ;;  %v1894_v19 = vrot.slane %v1893_v1, 1  ;;  %v1896_v31 = vadd.f32 %v1736_v16, %v1732_v44  ;;  %v1910_v42 = vadd.f32 %v1738_v15, %v1734_v13 }
 0x1d5   :  { %v1874_v56 = vadd.f32 %v1873_v29, %v1872_v25  ;;  %v1888_v9 = vadd.f32 %v1887_v22, %v1886_v60  ;;  %v1903_v26 = vadd.f32 %v1737_v45, %v1733_v63  ;;  %v1917_v32 = vadd.f32 %v1739_v8, %v1735_v35 }
 0x1d6   :  { %v1881_v17 = vadd.f32 %v1880_v51, %v1879_v12  ;;  %v1895_v58 = vadd.f32 %v1894_v19, %v1893_v1  ;;  %v1897_v59 = vrot.slane %v1896_v31, 4  ;;  %v1911_v38 = vrot.slane %v1910_v42, 4 }
 0x1d7   :  { %v1997_v21 = vmul.f32 0.0625, %v1874_v56  ;;  %v1999_v36 = vmul.f32 0.0625, %v1888_v9  ;;  %v1904_v11 = vrot.slane %v1903_v26, 4  ;;  %v1918_v18 = vrot.slane %v1917_v32, 4 }
 0x1d8   :  { %v3769_v27 = vmul.f32 0.0625, %v1881_v17  ;;  %v3771_v50 = vmul.f32 0.0625, %v1895_v58  ;;  %v1898_v57 = vadd.f32 %v1897_v59, %v1896_v31  ;;  %v1912_v6 = vadd.f32 %v1911_v38, %v1910_v42 }
 0x1d9   :  { %v3774_v44 = vsel %vm2051_vm11, %v1997_v21, %v2050_v24  ;;  %v3777_v13 = vsel %vm2051_vm11, %v1999_v36, %v2068_v54  ;;  %v1905_v63 = vadd.f32 %v1904_v11, %v1903_v26  ;;  %v1919_v35 = vadd.f32 %v1918_v18, %v1917_v32 }
 0x1da   :  { %v1899_v25 = vrot.slane %v1898_v57, 2  ;;  %v1913_v60 = vrot.slane %v1912_v6, 2  ;;  %v1676_v47 = vadd.f32 %v3591_v53, %v3697_v3  ;;  %v1678_v46 = vadd.f32 %v3593_v23, %v3699_v0 }
 0x1db   :  { %v1906_v12 = vrot.slane %v1905_v63, 2  ;;  %v1920_v1 = vrot.slane %v1919_v35, 2  ;;  %v1677_v16 = vadd.f32 %v3595_v20, %v3705_v2  ;;  %v1679_v24 = vadd.f32 %v3597_v43, %v3707_v14 }
 0x1dc   :  { %v1900_v54 = vadd.f32 %v1899_v25, %v1898_v57  ;;  %v1914_v15 = vadd.f32 %v1913_v60, %v1912_v6  ;;  %v1740_v29 = vmax.f32 %v1676_v47, 0.0  ;;  %v1742_v22 = vmax.f32 %v1678_v46, 0.0 }
 0x1dd   :  { %v1907_v45 = vadd.f32 %v1906_v12, %v1905_v63  ;;  %v1921_v8 = vadd.f32 %v1920_v1, %v1919_v35  ;;  %v1741_v51 = vmax.f32 %v1677_v16, 0.0  ;;  %v1743_v19 = vmax.f32 %v1679_v24, 0.0 }
 0x1de   :  { %v1901_v3 = vrot.slane %v1900_v54, 1  ;;  %v1915_v31 = vrot.slane %v1914_v15, 1  ;;  %v1680_v0 = vadd.f32 %v3591_v53, %v3713_v61  ;;  %v1682_v42 = vadd.f32 %v3593_v23, %v3715_v62 }
 0x1df   :  { %v1908_v2 = vrot.slane %v1907_v45, 1  ;;  %v1922_v56 = vrot.slane %v1921_v8, 1  ;;  %v1681_v14 = vadd.f32 %v3595_v20, %v3717_v41  ;;  %v1683_v9 = vadd.f32 %v3597_v43, %v3719_v52 }
 0x1e0   :  { %v1902_v26 = vadd.f32 %v1901_v3, %v1900_v54  ;;  %v1916_v32 = vadd.f32 %v1915_v31, %v1914_v15  ;;  %v1744_v17 = vmax.f32 %v1680_v0, 0.0  ;;  %v1746_v58 = vmax.f32 %v1682_v42, 0.0 }
 0x1e1   :  { %v1909_v59 = vadd.f32 %v1908_v2, %v1907_v45  ;;  %v1923_v38 = vadd.f32 %v1922_v56, %v1921_v8  ;;  %v1745_v21 = vmax.f32 %v1681_v14, 0.0  ;;  %v1747_v36 = vmax.f32 %v1683_v9, 0.0 }
 0x1e2   :  { %v3795_v61 = vmul.f32 0.0625, %v1902_v26  ;;  %v3797_v11 = vmul.f32 0.0625, %v1916_v32  ;;  %v1924_v62 = vadd.f32 %v1744_v17, %v1740_v29  ;;  %v1938_v18 = vadd.f32 %v1746_v58, %v1742_v22 }
 0x1e3   :  { %v3799_v57 = vmul.f32 0.0625, %v1909_v59  ;;  %v3801_v41 = vmul.f32 0.0625, %v1923_v38  ;;  %v1931_v6 = vadd.f32 %v1745_v21, %v1741_v51  ;;  %v1945_v52 = vadd.f32 %v1747_v36, %v1743_v19 }
 0x1e4   :  { %v1925_v63 = vrot.slane %v1924_v62, 4  ;;  %v1939_v35 = vrot.slane %v1938_v18, 4  ;;  %v1684_v25 = vadd.f32 %v3591_v53, %v3729_v33  ;;  %v1686_v60 = vadd.f32 %v3593_v23, %v3731_v39 }
 0x1e5   :  { %v1932_v47 = vrot.slane %v1931_v6, 4  ;;  %v1946_v46 = vrot.slane %v1945_v52, 4  ;;  %v1685_v12 = vadd.f32 %v3595_v20, %v3733_v34  ;;  %v1687_v1 = vadd.f32 %v3597_v43, %v3735_v5 }
 0x1e6   :  { %v1926_v16 = vadd.f32 %v1925_v63, %v1924_v62  ;;  %v1940_v24 = vadd.f32 %v1939_v35, %v1938_v18  ;;  %v1748_v54 = vmax.f32 %v1684_v25, 0.0  ;;  %v1750_v15 = vmax.f32 %v1686_v60, 0.0 }
 0x1e7   :  { %v1933_v29 = vadd.f32 %v1932_v47, %v1931_v6  ;;  %v1947_v22 = vadd.f32 %v1946_v46, %v1945_v52  ;;  %v1749_v45 = vmax.f32 %v1685_v12, 0.0  ;;  %v1751_v8 = vmax.f32 %v1687_v1, 0.0 }
 0x1e8   :  { %v1927_v33 = vrot.slane %v1926_v16, 2  ;;  %v1941_v51 = vrot.slane %v1940_v24, 2  ;;  %v1688_v39 = vadd.f32 %v3591_v53, %v3741_v10  ;;  %v1690_v19 = vadd.f32 %v3593_v23, %v3743_v49 }
 0x1e9   :  { %v1934_v34 = vrot.slane %v1933_v29, 2  ;;  %v1948_v3 = vrot.slane %v1947_v22, 2  ;;  %v1689_v5 = vadd.f32 %v3595_v20, %v3749_v4  ;;  %v1691_v31 = vadd.f32 %v3597_v43, %v3751_v55 }
 0x1ea   :  { %v1928_v0 = vadd.f32 %v1927_v33, %v1926_v16  ;;  %v1942_v42 = vadd.f32 %v1941_v51, %v1940_v24  ;;  %v1752_v2 = vmax.f32 %v1688_v39, 0.0  ;;  %v1754_v56 = vmax.f32 %v1690_v19, 0.0 }
 0x1eb   :  { %v1935_v14 = vadd.f32 %v1934_v34, %v1933_v29  ;;  %v1949_v9 = vadd.f32 %v1948_v3, %v1947_v22  ;;  %v1753_v53 = vmax.f32 %v1689_v5, 0.0  ;;  %v1755_v10 = vmax.f32 %v1691_v31, 0.0 }
 0x1ec   :  { %v1929_v26 = vrot.slane %v1928_v0, 1  ;;  %v1943_v23 = vrot.slane %v1942_v42, 1  ;;  %v1952_v49 = vadd.f32 %v1752_v2, %v1748_v54  ;;  %v1966_v32 = vadd.f32 %v1754_v56, %v1750_v15 }
 0x1ed   :  { %v1936_v17 = vrot.slane %v1935_v14, 1  ;;  %v1950_v58 = vrot.slane %v1949_v9, 1  ;;  %v1959_v20 = vadd.f32 %v1753_v53, %v1749_v45  ;;  %v1973_v4 = vadd.f32 %v1755_v10, %v1751_v8 }
 0x1ee   :  { %v1930_v59 = vadd.f32 %v1929_v26, %v1928_v0  ;;  %v1944_v43 = vadd.f32 %v1943_v23, %v1942_v42  ;;  %v1953_v55 = vrot.slane %v1952_v49, 4  ;;  %v1967_v38 = vrot.slane %v1966_v32, 4 }
 0x1ef   :  { %v1937_v21 = vadd.f32 %v1936_v17, %v1935_v14  ;;  %v1951_v36 = vadd.f32 %v1950_v58, %v1949_v9  ;;  %v1960_v62 = vrot.slane %v1959_v20, 4  ;;  %v1974_v18 = vrot.slane %v1973_v4, 4  ;;  %v2624_v17 = vld [vmem:[%s3869_s3 + $0x1] ss:$0 sm:$0xff] }
 0x1f0   :  { %v2005_v6 = vmul.f32 0.0625, %v1930_v59  ;;  %v2007_v52 = vmul.f32 0.0625, %v1944_v43  ;;  %v1954_v63 = vadd.f32 %v1953_v55, %v1952_v49  ;;  %v1968_v35 = vadd.f32 %v1967_v38, %v1966_v32 }
 0x1f1   :  { %v2006_v25 = vmul.f32 0.0625, %v1937_v21  ;;  %v2008_v60 = vmul.f32 0.0625, %v1951_v36  ;;  %v1961_v47 = vadd.f32 %v1960_v62, %v1959_v20  ;;  %v1975_v46 = vadd.f32 %v1974_v18, %v1973_v4  ;;  %v2657_v18 = vld [vmem:[%s3869_s3 + $0x2] ss:$0 sm:$0xff]  ;;  %s3006_s3 = scalar_lea.vmem %s2469_s21, 16 }
 0x1f2   :  { %v1955_v12 = vrot.slane %v1954_v63, 2  ;;  %v1969_v1 = vrot.slane %v1968_v35, 2  ;;  %v2061_v16 = vsel %vm2049_vm10, %v3737_v48, %v3691_v37  ;;  %v2075_v24 = vsel %vm2049_vm10, %v3739_v28, %v3695_v7  ;;  %p3007_p2 = scmp.ne.s32.totalorder %s2469_s21, %s3006_s3  ;;  %p3012_p4 = scmp.lt.s32.totalorder %s3010_s22, %s3006_s3 }
 0x1f3   :  { %v1962_v54 = vrot.slane %v1961_v47, 2  ;;  %v1976_v15 = vrot.slane %v1975_v46, 2  ;;  %v2062_v29 = vsel %vm2051_vm11, %v3769_v27, %v2061_v16  ;;  %v2076_v22 = vsel %vm2051_vm11, %v3771_v50, %v2075_v24 }
 0x1f4   :  { %v1956_v45 = vadd.f32 %v1955_v12, %v1954_v63  ;;  %v1970_v8 = vadd.f32 %v1969_v1, %v1968_v35  ;;  %v2063_v33 = vsel %vm2053_vm12, %v3799_v57, %v2062_v29  ;;  %v2077_v37 = vsel %vm2053_vm12, %v3801_v41, %v2076_v22  ;;  %p3013_p5 = por %p3012_p4, %p3011_p3 }
 0x1f5   :  { %v1963_v48 = vadd.f32 %v1962_v54, %v1961_v47  ;;  %v1977_v51 = vadd.f32 %v1976_v15, %v1975_v46  ;;  %v2064_v7 = vsel %vm2055_vm13, %v2006_v25, %v2063_v33  ;;  %v2078_v28 = vsel %vm2055_vm13, %v2008_v60, %v2077_v37 }
 0x1f6   :  { %v1957_v39 = vrot.slane %v1956_v45, 1  ;;  %v1971_v19 = vrot.slane %v1970_v8, 1  ;;  %v2054_v27 = vsel %vm2053_vm12, %v3795_v61, %v3774_v44  ;;  %v2070_v50 = vsel %vm2053_vm12, %v3797_v11, %v3777_v13  ;;  %p3014_p6 = pnand %p3013_p5, %p3007_p2 }
 0x1f7   :  { %v1964_v57 = vrot.slane %v1963_v48, 1  ;;  %v1978_v34 = vrot.slane %v1977_v51, 1  ;;  %v2056_v41 = vsel %vm2055_vm13, %v2005_v6, %v2054_v27  ;;  %v2071_v3 = vsel %vm2055_vm13, %v2007_v52, %v2070_v50 }
 0x1f8   :  { %v1958_v5 = vadd.f32 %v1957_v39, %v1956_v45  ;;  %v1972_v31 = vadd.f32 %v1971_v19, %v1970_v8  ;;  %v2454_v63 = vand.u32 127, %v1608_v30  ;;  %v2450_v35 = vstv %s3870_s4 }
 0x1f9   :  { %v1965_v0 = vadd.f32 %v1964_v57, %v1963_v48  ;;  %v1979_v42 = vadd.f32 %v1978_v34, %v1977_v51 }
 0x1fa   :  { %v2009_v2 = vmul.f32 0.0625, %v1958_v5  ;;  %v2011_v56 = vmul.f32 0.0625, %v1972_v31  ;;  %v2457_v25 = vsub.s32 %v2454_v63, %v3582_v40 }
 0x1fb   :  { %v2010_v14 = vmul.f32 0.0625, %v1965_v0  ;;  %v2012_v9 = vmul.f32 0.0625, %v1979_v42 }
 0x1fc   :  { %v2058_v44 = vsel %vm2057_vm14, %v2009_v2, %v2056_v41  ;;  %v2072_v61 = vsel %vm2057_vm14, %v2011_v56, %v2071_v3 }
 0x1fd   :  { %v2065_v53 = vsel %vm2057_vm14, %v2010_v14, %v2064_v7  ;;  %v2079_v10 = vsel %vm2057_vm14, %v2012_v9, %v2078_v28  ;;  %v2095_v26 = vpack.c.bf16 %v2058_v44, %v2058_v44  ;;  %v2097_v23 = vpack.c.bf16 %v2072_v61, %v2072_v61 }
 0x1fe   :  { %v2096_v13 = vpack.c.bf16 %v2065_v53, %v2065_v53  ;;  %v2098_v11 = vpack.c.bf16 %v2079_v10, %v2079_v10 }
 0x200   :  { %2392 = vmatprep.mubr.bf16.mxu0 %v2096_v13  ;;  %2432 = vmatprep.mubr.bf16.mxu1 %v2098_v11 }
 0x201   :  { %2393 = vmatmul.mubr.bf16.vlgmr.msra.gmra.mrb[32].mxu0 %v2095_v26  ;;  %2433 = vmatmul.mubr.bf16.vlgmr.msra.gmra.mrb[32].mxu1 %v2097_v23 }
 0x2d4   :  { %v2674_v49 = vpop.f32.mrb[32].mxu0  ;;  %v2696_v32 = vpop.f32.mrb[32].mxu1 }
 0x2d5   :  { %v2675_v58 = vpop.f32.mrb[33].mxu0  ;;  %v2697_v20 = vpop.f32.mrb[33].mxu1 }
 0x2d6   :  { %v2676_v4 = vadd.f32 %v2675_v58, %v2674_v49  ;;  %v2698_v59 = vadd.f32 %v2697_v20, %v2696_v32  ;;  %v2677_v43 = vpop.f32.mrb[34].mxu0  ;;  %v2699_v55 = vpop.f32.mrb[34].mxu1 }
 0x2d7   :  { %v2678_v38 = vpop.f32.mrb[35].mxu0  ;;  %v2700_v21 = vpop.f32.mrb[35].mxu1 }
 0x2d8   :  { %v2395_v36 = vadd.f32 %v2676_v4, %v2624_v17 }
 0x2da   :  { %v2435_v62 = vadd.f32 %v2698_v59, %v2395_v36 }
 0x2dc   :  { %v2440_v6 = vmax.f32 %v2435_v62, 0.0 }
 0x2de   :  { %v2446_v52 = vmul.f32 %v2657_v18, %v2440_v6 }
 0x2e0   :  { %2447 = vadd.xlane.f32.xlu0 %v2446_v52 }
 0x36d   :  { %v2448_v60 = vpop.xlane.xlu0 %2447 }
 0x36e   :  { %v2451_v47 = vadd.f32 %v2450_v35, %v2448_v60 }
 0x370   :  { %v2458_v46 = vrot.slane %v2451_v47, %v2457_v25 }
 0x372   :  { %2461 = vst.msk [vmem:[#allocation9] sm:$0x1] %vm2460_vm15, %v2458_v46 }
 0x373   :  { %3017 = shalt.err (!%p3014_p6)
}
 0x374   :  { %s3018_s24 = scalar_lea.hbm %s3871_s5, 16 }
 0x375   :  { %p3019_p7 = scmp.ne.s32.totalorder %s3871_s5, %s3018_s24  ;;  %p3022_p8 = scmp.lt.u32.totalorder %s3018_s24, %s3871_s5 }
 0x377   :  { %p3024_p9 = pnand %p3022_p8, %p3019_p7 }
 0x379   :  { %3027 = shalt.err (!%p3024_p9)
}
 0x37a   :  { %2471 = dma.vmem_to_hbm [thread:$0]  %s2469_s21, 16, %s3871_s5, [#allocation6]  }
 0x37b   :  { %3032 = dma.done.wait [#allocation6], 16  }
 0x37c   :  { %3033 = vsyncadd [#allocation6], 4294967280 }
 0x37d   :  { %2475 = vsyncpa [#allocation5], 1 }
 0x37e   :  { %2476 = vsyncpa [#allocation8], 1 }
 0x37f   :  { %2477 = vsyncpa [#allocation6], 1 }

</bundles_post_ra>
